<compile_context>
chip_gen: v6e
topology: v6e:2x2x1
jax: 0.10.0
libtpu: 0.0.40
codegen_flags: <defaults>
</compile_context>

<pallas_src>
import jax
import jax.numpy as jnp
from jax.experimental import pallas as pl
from jax.experimental.pallas import tpu as pltpu


# ----------------------------------------------------------------------------
# Kernel
# ----------------------------------------------------------------------------
def _make_lstm_kernel(num_layers: int, seq_len: int, tb: int, hidden: int):
    """Fused multi-layer LSTM + fc + GELU + out-linear for one batch tile."""

    def kernel(*refs):
        # inputs: x, [w_ih, w_hh, b] * L, w_fc, b_fc, w_out, b_out
        x_ref = refs[0]                                   # (S, TB, D_in) time-major
        layer_refs = refs[1:1 + 3 * num_layers]
        w_fc_ref, b_fc_ref, w_out_ref, b_out_ref = refs[1 + 3 * num_layers:
                                                        5 + 3 * num_layers]
        out_ref = refs[5 + 3 * num_layers]                # (S, TB, 1)
        seq_buf = refs[6 + 3 * num_layers]                # VMEM scratch (S*TB, H)

        H = hidden
        for l in range(num_layers):
            # Hoist weight loads out of the time loop (stay in vregs/VMEM).
            w_ih = layer_refs[3 * l][...]                 # (D_l, 4H)
            w_hh = layer_refs[3 * l + 1][...]             # (H, 4H)
            b = layer_refs[3 * l + 2][...]                # (1, 4H)  (b_ih + b_hh)

            h = jnp.zeros((tb, H), jnp.float32)
            c = jnp.zeros((tb, H), jnp.float32)

            for t in range(seq_len):                      # static unrolled recurrence
                if l == 0:
                    x_t = x_ref[t]                        # (TB, D_in)
                else:
                    # previous layer's output at time t (in-place layer update)
                    x_t = seq_buf[t * tb:(t + 1) * tb, :]
                # lane-dense (TB, 4H) gate pre-activations on the MXU
                gates = (jnp.dot(x_t, w_ih, preferred_element_type=jnp.float32)
                         + jnp.dot(h, w_hh, preferred_element_type=jnp.float32)
                         + b)
                i_g = jax.nn.sigmoid(gates[:, 0:H])       # PyTorch gate order i,f,g,o
                f_g = jax.nn.sigmoid(gates[:, H:2 * H])
                g_g = jnp.tanh(gates[:, 2 * H:3 * H])
                o_g = jax.nn.sigmoid(gates[:, 3 * H:4 * H])
                c = f_g * c + i_g * g_g
                h = o_g * jnp.tanh(c)
                seq_buf[t * tb:(t + 1) * tb, :] = h
            # inter-layer dropout is identity in eval mode

        # Head over all S*TB rows at once (one batched matmul, lane-dense).
        hs = seq_buf[...]                                                   # (S*TB, H)
        y = jnp.dot(hs, w_fc_ref[...],
                    preferred_element_type=jnp.float32) + b_fc_ref[...]     # (S*TB, F)
        y = jax.nn.gelu(y, approximate=True)
        # out linear has a single output feature -> lane reduction, not N=1 matmul
        z = jnp.sum(y * w_out_ref[...], axis=1, keepdims=True) + b_out_ref[...]  # (S*TB,1)

        for t in range(seq_len):                          # static stores, time-major
            out_ref[t] = z[t * tb:(t + 1) * tb, :]

    return kernel


# ----------------------------------------------------------------------------
# Wrapper
# ----------------------------------------------------------------------------
def my_lstm_forward(x, params, *, batch_tile=None):
    """Forward pass of MyLSTM (eval mode, threshold=None).

    x: (B, S, input_dim) float32, dense padded, batch-first.
    params: {"layers": [{"w_ih": (4H, D_l), "w_hh": (4H, H),
                         "b_ih": (4H,), "b_hh": (4H,)}, ...],   # PyTorch layout
             "w_fc": (fc_dim, H), "b_fc": (fc_dim,),
             "w_out": (1, fc_dim), "b_out": (1,)}
    Returns: (B, S, 1) float32.
    """
    B, S, D = x.shape
    layers = params["layers"]
    L = len(layers)
    H = layers[0]["w_hh"].shape[1]

    if batch_tile is None:
        batch_tile = B                       # tiny B: one tile (TB>1 must divide B;
    assert B % batch_tile == 0               # for TB<B it must be a multiple of 8)
    nb = B // batch_tile

    # ---- glue (plain JAX, parameter prep only): transpose for right-multiply,
    #      fold the two LSTM biases into one.
    weight_arrays = []
    for lp in layers:
        weight_arrays.append(jnp.asarray(lp["w_ih"], jnp.float32).T)          # (D_l, 4H)
        weight_arrays.append(jnp.asarray(lp["w_hh"], jnp.float32).T)          # (H, 4H)
        weight_arrays.append(
            (jnp.asarray(lp["b_ih"], jnp.float32)
             + jnp.asarray(lp["b_hh"], jnp.float32))[None, :])                # (1, 4H)
    weight_arrays.append(jnp.asarray(params["w_fc"], jnp.float32).T)          # (H, fc)
    weight_arrays.append(jnp.asarray(params["b_fc"], jnp.float32)[None, :])   # (1, fc)
    weight_arrays.append(jnp.asarray(params["w_out"], jnp.float32))           # (1, fc)
    weight_arrays.append(jnp.asarray(params["b_out"], jnp.float32)[None, :])  # (1, 1)

    x_tm = jnp.transpose(x, (1, 0, 2)).astype(jnp.float32)                    # (S, B, D)

    kernel = _make_lstm_kernel(L, S, batch_tile, H)

    def _full_spec(arr):
        n = arr.ndim
        return pl.BlockSpec(arr.shape, lambda i, n=n: (0,) * n)

    in_specs = [pl.BlockSpec((S, batch_tile, D), lambda i: (0, i, 0))]
    in_specs += [_full_spec(a) for a in weight_arrays]

    out_tm = pl.pallas_call(
        kernel,
        out_shape=jax.ShapeDtypeStruct((S, B, 1), jnp.float32),
        grid=(nb,),
        in_specs=in_specs,
        out_specs=pl.BlockSpec((S, batch_tile, 1), lambda i: (0, i, 0)),
        scratch_shapes=[pltpu.VMEM((S * batch_tile, H), jnp.float32)],
        compiler_params=pltpu.CompilerParams(
            dimension_semantics=("parallel",)),
    )(x_tm, *weight_arrays)

    return jnp.transpose(out_tm, (1, 0, 2))               # (B, S, 1)


# ----------------------------------------------------------------------------
# Pure-JAX reference (same math, high precision) for validation
# ----------------------------------------------------------------------------
def ref_forward(x, params):
    hp = jax.lax.Precision.HIGHEST
    B, S, D = x.shape
    H = params["layers"][0]["w_hh"].shape[1]
    seq = x.astype(jnp.float32)
    for lp in params["layers"]:
        w_ih_t = lp["w_ih"].T
        w_hh_t = lp["w_hh"].T
        b = (lp["b_ih"] + lp["b_hh"])[None, :]
        h = jnp.zeros((B, H), jnp.float32)
        c = jnp.zeros((B, H), jnp.float32)
        outs = []
        for t in range(S):
            gates = (jnp.dot(seq[:, t, :], w_ih_t, precision=hp)
                     + jnp.dot(h, w_hh_t, precision=hp) + b)
            i_g = jax.nn.sigmoid(gates[:, 0:H])
            f_g = jax.nn.sigmoid(gates[:, H:2 * H])
            g_g = jnp.tanh(gates[:, 2 * H:3 * H])
            o_g = jax.nn.sigmoid(gates[:, 3 * H:4 * H])
            c = f_g * c + i_g * g_g
            h = o_g * jnp.tanh(c)
            outs.append(h)
        seq = jnp.stack(outs, axis=1)                      # (B, S, H)
    y = jax.nn.gelu(
        jnp.einsum("bsh,fh->bsf", seq, params["w_fc"], precision=hp)
        + params["b_fc"], approximate=True)
    out = (jnp.einsum("bsf,of->bso", y, params["w_out"], precision=hp)
           + params["b_out"])
    return out                                             # (B, S, 1)


# ----------------------------------------------------------------------------
if __name__ == "__main__":
    B, S = 2, 8
    INPUT_DIM, LSTM_DIM, LSTM_LAYERS, FC_DIM = 16, 32, 2, 32   # 4*LSTM_DIM = 128 lanes

    _keys = iter(jax.random.split(jax.random.PRNGKey(0), 16))

    def rnd(shape, scale):
        return scale * jax.random.normal(next(_keys), shape, dtype=jnp.float32)

    x = rnd((B, S, INPUT_DIM), 1.0)

    layer_params = []
    for l in range(LSTM_LAYERS):
        d_in = INPUT_DIM if l == 0 else LSTM_DIM
        layer_params.append(dict(
            w_ih=rnd((4 * LSTM_DIM, d_in), 0.1),
            w_hh=rnd((4 * LSTM_DIM, LSTM_DIM), 0.1),
            b_ih=rnd((4 * LSTM_DIM,), 0.05),
            b_hh=rnd((4 * LSTM_DIM,), 0.05),
        ))
    params = dict(
        layers=layer_params,
        w_fc=rnd((FC_DIM, LSTM_DIM), 0.1),
        b_fc=rnd((FC_DIM,), 0.05),
        w_out=rnd((1, FC_DIM), 0.1),
        b_out=rnd((1,), 0.05),
    )

    out = my_lstm_forward(x, params)
    out = jax.block_until_ready(out)
    assert out.shape == (B, S, 1)

    ref = ref_forward(x, params)
    max_err = float(jnp.max(jnp.abs(out - ref)))
    assert jnp.allclose(out, ref, atol=1e-2, rtol=1e-2), f"mismatch, max_err={max_err}"

    print("KERNEL_OK")
</pallas_src>

<mosaic_0001>
module attributes {stable_mosaic.version = 11 : i64} {
  func.func @kernel(%arg0: i32, %arg1: memref<8x2x16xf32, #tpu.memory_space<vmem>>, %arg2: memref<16x128xf32, #tpu.memory_space<vmem>>, %arg3: memref<32x128xf32, #tpu.memory_space<vmem>>, %arg4: memref<1x128xf32, #tpu.memory_space<vmem>>, %arg5: memref<32x128xf32, #tpu.memory_space<vmem>>, %arg6: memref<32x128xf32, #tpu.memory_space<vmem>>, %arg7: memref<1x128xf32, #tpu.memory_space<vmem>>, %arg8: memref<32x32xf32, #tpu.memory_space<vmem>>, %arg9: memref<1x32xf32, #tpu.memory_space<vmem>>, %arg10: memref<1x32xf32, #tpu.memory_space<vmem>>, %arg11: memref<1x1xf32, #tpu.memory_space<vmem>>, %arg12: memref<8x2x1xf32, #tpu.memory_space<vmem>>, %arg13: memref<16x32xf32, #tpu.memory_space<vmem>>) attributes {dimension_semantics = [#tpu.dimension_semantics<parallel>], iteration_bounds = array<i64: 1>, scalar_prefetch = 0 : i64, scratch_operands = 1 : i64, tpu.core_type = #tpu.core_type<tc>, window_params = [{transform_indices = @transform_0, window_bounds = array<i64: 8, 2, 16>}, {pipeline_mode = #tpu.pipeline_mode<synchronous>, transform_indices = @transform_1, window_bounds = array<i64: 16, 128>}, {pipeline_mode = #tpu.pipeline_mode<synchronous>, transform_indices = @transform_2, window_bounds = array<i64: 32, 128>}, {pipeline_mode = #tpu.pipeline_mode<synchronous>, transform_indices = @transform_3, window_bounds = array<i64: 1, 128>}, {pipeline_mode = #tpu.pipeline_mode<synchronous>, transform_indices = @transform_4, window_bounds = array<i64: 32, 128>}, {pipeline_mode = #tpu.pipeline_mode<synchronous>, transform_indices = @transform_5, window_bounds = array<i64: 32, 128>}, {pipeline_mode = #tpu.pipeline_mode<synchronous>, transform_indices = @transform_6, window_bounds = array<i64: 1, 128>}, {pipeline_mode = #tpu.pipeline_mode<synchronous>, transform_indices = @transform_7, window_bounds = array<i64: 32, 32>}, {pipeline_mode = #tpu.pipeline_mode<synchronous>, transform_indices = @transform_8, window_bounds = array<i64: 1, 32>}, {pipeline_mode = #tpu.pipeline_mode<synchronous>, transform_indices = @transform_9, window_bounds = array<i64: 1, 32>}, {pipeline_mode = #tpu.pipeline_mode<synchronous>, transform_indices = @transform_10, window_bounds = array<i64: 1, 1>}, {transform_indices = @transform_11, window_bounds = array<i64: 8, 2, 1>}]} {
    %c0 = arith.constant 0 : index
    %c0_0 = arith.constant 0 : index
    %0 = vector.load %arg2[%c0, %c0_0] : memref<16x128xf32, #tpu.memory_space<vmem>>, vector<16x128xf32>
    %c0_1 = arith.constant 0 : index
    %c0_2 = arith.constant 0 : index
    %1 = vector.load %arg3[%c0_1, %c0_2] : memref<32x128xf32, #tpu.memory_space<vmem>>, vector<32x128xf32>
    %c0_3 = arith.constant 0 : index
    %c0_4 = arith.constant 0 : index
    %2 = vector.load %arg4[%c0_3, %c0_4] : memref<1x128xf32, #tpu.memory_space<vmem>>, vector<1x128xf32>
    %cst = arith.constant 0.000000e+00 : f32
    %3 = vector.broadcast %cst : f32 to vector<2x32xf32>
    %cst_5 = arith.constant 0.000000e+00 : f32
    %4 = vector.broadcast %cst_5 : f32 to vector<2x32xf32>
    %c0_6 = arith.constant 0 : index
    %c0_7 = arith.constant 0 : index
    %c0_8 = arith.constant 0 : index
    %5 = vector.load %arg1[%c0_6, %c0_7, %c0_8] : memref<8x2x16xf32, #tpu.memory_space<vmem>>, vector<1x2x16xf32>
    %6 = vector.shape_cast %5 : vector<1x2x16xf32> to vector<2x16xf32>
    %cst_9 = arith.constant dense<0.000000e+00> : vector<2x128xf32>
    %7 = tpu.matmul %6, %0, %cst_9 {dimension_numbers = #tpu.dot_dimension_numbers<[1], [0], [0], [1], [0, 0, 1, 1], [], []>} : vector<2x16xf32>, vector<16x128xf32>, vector<2x128xf32> -> vector<2x128xf32>
    %cst_10 = arith.constant dense<0.000000e+00> : vector<2x128xf32>
    %8 = tpu.matmul %3, %1, %cst_10 {dimension_numbers = #tpu.dot_dimension_numbers<[1], [0], [0], [1], [0, 0, 1, 1], [], []>} : vector<2x32xf32>, vector<32x128xf32>, vector<2x128xf32> -> vector<2x128xf32>
    %9 = arith.addf %7, %8 : vector<2x128xf32>
    %10 = vector.broadcast %2 : vector<1x128xf32> to vector<2x128xf32>
    %11 = arith.addf %9, %10 : vector<2x128xf32>
    %12 = vector.extract_strided_slice %11 {offsets = [0, 0], sizes = [2, 32], strides = [1, 1]} : vector<2x128xf32> to vector<2x32xf32>
    %13 = arith.negf %12 : vector<2x32xf32>
    %14 = math.exp %13 : vector<2x32xf32>
    %cst_11 = arith.constant 1.000000e+00 : f32
    %15 = vector.broadcast %cst_11 : f32 to vector<2x32xf32>
    %16 = arith.addf %15, %14 : vector<2x32xf32>
    %17 = arith.divf %15, %16 : vector<2x32xf32>
    %18 = vector.extract_strided_slice %11 {offsets = [0, 32], sizes = [2, 32], strides = [1, 1]} : vector<2x128xf32> to vector<2x32xf32>
    %19 = arith.negf %18 : vector<2x32xf32>
    %20 = math.exp %19 : vector<2x32xf32>
    %cst_12 = arith.constant 1.000000e+00 : f32
    %21 = vector.broadcast %cst_12 : f32 to vector<2x32xf32>
    %22 = arith.addf %21, %20 : vector<2x32xf32>
    %23 = arith.divf %21, %22 : vector<2x32xf32>
    %24 = vector.extract_strided_slice %11 {offsets = [0, 64], sizes = [2, 32], strides = [1, 1]} : vector<2x128xf32> to vector<2x32xf32>
    %25 = math.tanh %24 : vector<2x32xf32>
    %26 = vector.extract_strided_slice %11 {offsets = [0, 96], sizes = [2, 32], strides = [1, 1]} : vector<2x128xf32> to vector<2x32xf32>
    %27 = arith.negf %26 : vector<2x32xf32>
    %28 = math.exp %27 : vector<2x32xf32>
    %cst_13 = arith.constant 1.000000e+00 : f32
    %29 = vector.broadcast %cst_13 : f32 to vector<2x32xf32>
    %30 = arith.addf %29, %28 : vector<2x32xf32>
    %31 = arith.divf %29, %30 : vector<2x32xf32>
    %32 = arith.mulf %23, %4 : vector<2x32xf32>
    %33 = arith.mulf %17, %25 : vector<2x32xf32>
    %34 = arith.addf %32, %33 : vector<2x32xf32>
    %35 = math.tanh %34 : vector<2x32xf32>
    %36 = arith.mulf %31, %35 : vector<2x32xf32>
    %c0_14 = arith.constant 0 : index
    %c0_15 = arith.constant 0 : index
    %37 = vector.load %arg13[%c0_14, %c0_15] : memref<16x32xf32, #tpu.memory_space<vmem>>, vector<2x32xf32>
    tpu.vector_store %arg13[%c0_14, %c0_15], %36 {strides = array<i32>} : memref<16x32xf32, #tpu.memory_space<vmem>>, vector<2x32xf32>,
    %c1 = arith.constant 1 : index
    %c0_16 = arith.constant 0 : index
    %c0_17 = arith.constant 0 : index
    %38 = vector.load %arg1[%c1, %c0_16, %c0_17] : memref<8x2x16xf32, #tpu.memory_space<vmem>>, vector<1x2x16xf32>
    %39 = vector.shape_cast %38 : vector<1x2x16xf32> to vector<2x16xf32>
    %cst_18 = arith.constant dense<0.000000e+00> : vector<2x128xf32>
    %40 = tpu.matmul %39, %0, %cst_18 {dimension_numbers = #tpu.dot_dimension_numbers<[1], [0], [0], [1], [0, 0, 1, 1], [], []>} : vector<2x16xf32>, vector<16x128xf32>, vector<2x128xf32> -> vector<2x128xf32>
    %cst_19 = arith.constant dense<0.000000e+00> : vector<2x128xf32>
    %41 = tpu.matmul %36, %1, %cst_19 {dimension_numbers = #tpu.dot_dimension_numbers<[1], [0], [0], [1], [0, 0, 1, 1], [], []>} : vector<2x32xf32>, vector<32x128xf32>, vector<2x128xf32> -> vector<2x128xf32>
    %42 = arith.addf %40, %41 : vector<2x128xf32>
    %43 = vector.broadcast %2 : vector<1x128xf32> to vector<2x128xf32>
    %44 = arith.addf %42, %43 : vector<2x128xf32>
    %45 = vector.extract_strided_slice %44 {offsets = [0, 0], sizes = [2, 32], strides = [1, 1]} : vector<2x128xf32> to vector<2x32xf32>
    %46 = arith.negf %45 : vector<2x32xf32>
    %47 = math.exp %46 : vector<2x32xf32>
    %cst_20 = arith.constant 1.000000e+00 : f32
    %48 = vector.broadcast %cst_20 : f32 to vector<2x32xf32>
    %49 = arith.addf %48, %47 : vector<2x32xf32>
    %50 = arith.divf %48, %49 : vector<2x32xf32>
    %51 = vector.extract_strided_slice %44 {offsets = [0, 32], sizes = [2, 32], strides = [1, 1]} : vector<2x128xf32> to vector<2x32xf32>
    %52 = arith.negf %51 : vector<2x32xf32>
    %53 = math.exp %52 : vector<2x32xf32>
    %cst_21 = arith.constant 1.000000e+00 : f32
    %54 = vector.broadcast %cst_21 : f32 to vector<2x32xf32>
    %55 = arith.addf %54, %53 : vector<2x32xf32>
    %56 = arith.divf %54, %55 : vector<2x32xf32>
    %57 = vector.extract_strided_slice %44 {offsets = [0, 64], sizes = [2, 32], strides = [1, 1]} : vector<2x128xf32> to vector<2x32xf32>
    %58 = math.tanh %57 : vector<2x32xf32>
    %59 = vector.extract_strided_slice %44 {offsets = [0, 96], sizes = [2, 32], strides = [1, 1]} : vector<2x128xf32> to vector<2x32xf32>
    %60 = arith.negf %59 : vector<2x32xf32>
    %61 = math.exp %60 : vector<2x32xf32>
    %cst_22 = arith.constant 1.000000e+00 : f32
    %62 = vector.broadcast %cst_22 : f32 to vector<2x32xf32>
    %63 = arith.addf %62, %61 : vector<2x32xf32>
    %64 = arith.divf %62, %63 : vector<2x32xf32>
    %65 = arith.mulf %56, %34 : vector<2x32xf32>
    %66 = arith.mulf %50, %58 : vector<2x32xf32>
    %67 = arith.addf %65, %66 : vector<2x32xf32>
    %68 = math.tanh %67 : vector<2x32xf32>
    %69 = arith.mulf %64, %68 : vector<2x32xf32>
    %c2 = arith.constant 2 : index
    %c0_23 = arith.constant 0 : index
    %70 = vector.load %arg13[%c2, %c0_23] : memref<16x32xf32, #tpu.memory_space<vmem>>, vector<2x32xf32>
    tpu.vector_store %arg13[%c2, %c0_23], %69 {strides = array<i32>} : memref<16x32xf32, #tpu.memory_space<vmem>>, vector<2x32xf32>,
    %c2_24 = arith.constant 2 : index
    %c0_25 = arith.constant 0 : index
    %c0_26 = arith.constant 0 : index
    %71 = vector.load %arg1[%c2_24, %c0_25, %c0_26] : memref<8x2x16xf32, #tpu.memory_space<vmem>>, vector<1x2x16xf32>
    %72 = vector.shape_cast %71 : vector<1x2x16xf32> to vector<2x16xf32>
    %cst_27 = arith.constant dense<0.000000e+00> : vector<2x128xf32>
    %73 = tpu.matmul %72, %0, %cst_27 {dimension_numbers = #tpu.dot_dimension_numbers<[1], [0], [0], [1], [0, 0, 1, 1], [], []>} : vector<2x16xf32>, vector<16x128xf32>, vector<2x128xf32> -> vector<2x128xf32>
    %cst_28 = arith.constant dense<0.000000e+00> : vector<2x128xf32>
    %74 = tpu.matmul %69, %1, %cst_28 {dimension_numbers = #tpu.dot_dimension_numbers<[1], [0], [0], [1], [0, 0, 1, 1], [], []>} : vector<2x32xf32>, vector<32x128xf32>, vector<2x128xf32> -> vector<2x128xf32>
    %75 = arith.addf %73, %74 : vector<2x128xf32>
    %76 = vector.broadcast %2 : vector<1x128xf32> to vector<2x128xf32>
    %77 = arith.addf %75, %76 : vector<2x128xf32>
    %78 = vector.extract_strided_slice %77 {offsets = [0, 0], sizes = [2, 32], strides = [1, 1]} : vector<2x128xf32> to vector<2x32xf32>
    %79 = arith.negf %78 : vector<2x32xf32>
    %80 = math.exp %79 : vector<2x32xf32>
    %cst_29 = arith.constant 1.000000e+00 : f32
    %81 = vector.broadcast %cst_29 : f32 to vector<2x32xf32>
    %82 = arith.addf %81, %80 : vector<2x32xf32>
    %83 = arith.divf %81, %82 : vector<2x32xf32>
    %84 = vector.extract_strided_slice %77 {offsets = [0, 32], sizes = [2, 32], strides = [1, 1]} : vector<2x128xf32> to vector<2x32xf32>
    %85 = arith.negf %84 : vector<2x32xf32>
    %86 = math.exp %85 : vector<2x32xf32>
    %cst_30 = arith.constant 1.000000e+00 : f32
    %87 = vector.broadcast %cst_30 : f32 to vector<2x32xf32>
    %88 = arith.addf %87, %86 : vector<2x32xf32>
    %89 = arith.divf %87, %88 : vector<2x32xf32>
    %90 = vector.extract_strided_slice %77 {offsets = [0, 64], sizes = [2, 32], strides = [1, 1]} : vector<2x128xf32> to vector<2x32xf32>
    %91 = math.tanh %90 : vector<2x32xf32>
    %92 = vector.extract_strided_slice %77 {offsets = [0, 96], sizes = [2, 32], strides = [1, 1]} : vector<2x128xf32> to vector<2x32xf32>
    %93 = arith.negf %92 : vector<2x32xf32>
    %94 = math.exp %93 : vector<2x32xf32>
    %cst_31 = arith.constant 1.000000e+00 : f32
    %95 = vector.broadcast %cst_31 : f32 to vector<2x32xf32>
    %96 = arith.addf %95, %94 : vector<2x32xf32>
    %97 = arith.divf %95, %96 : vector<2x32xf32>
    %98 = arith.mulf %89, %67 : vector<2x32xf32>
    %99 = arith.mulf %83, %91 : vector<2x32xf32>
    %100 = arith.addf %98, %99 : vector<2x32xf32>
    %101 = math.tanh %100 : vector<2x32xf32>
    %102 = arith.mulf %97, %101 : vector<2x32xf32>
    %c4 = arith.constant 4 : index
    %c0_32 = arith.constant 0 : index
    %103 = vector.load %arg13[%c4, %c0_32] : memref<16x32xf32, #tpu.memory_space<vmem>>, vector<2x32xf32>
    tpu.vector_store %arg13[%c4, %c0_32], %102 {strides = array<i32>} : memref<16x32xf32, #tpu.memory_space<vmem>>, vector<2x32xf32>,
    %c3 = arith.constant 3 : index
    %c0_33 = arith.constant 0 : index
    %c0_34 = arith.constant 0 : index
    %104 = vector.load %arg1[%c3, %c0_33, %c0_34] : memref<8x2x16xf32, #tpu.memory_space<vmem>>, vector<1x2x16xf32>
    %105 = vector.shape_cast %104 : vector<1x2x16xf32> to vector<2x16xf32>
    %cst_35 = arith.constant dense<0.000000e+00> : vector<2x128xf32>
    %106 = tpu.matmul %105, %0, %cst_35 {dimension_numbers = #tpu.dot_dimension_numbers<[1], [0], [0], [1], [0, 0, 1, 1], [], []>} : vector<2x16xf32>, vector<16x128xf32>, vector<2x128xf32> -> vector<2x128xf32>
    %cst_36 = arith.constant dense<0.000000e+00> : vector<2x128xf32>
    %107 = tpu.matmul %102, %1, %cst_36 {dimension_numbers = #tpu.dot_dimension_numbers<[1], [0], [0], [1], [0, 0, 1, 1], [], []>} : vector<2x32xf32>, vector<32x128xf32>, vector<2x128xf32> -> vector<2x128xf32>
    %108 = arith.addf %106, %107 : vector<2x128xf32>
    %109 = vector.broadcast %2 : vector<1x128xf32> to vector<2x128xf32>
    %110 = arith.addf %108, %109 : vector<2x128xf32>
    %111 = vector.extract_strided_slice %110 {offsets = [0, 0], sizes = [2, 32], strides = [1, 1]} : vector<2x128xf32> to vector<2x32xf32>
    %112 = arith.negf %111 : vector<2x32xf32>
    %113 = math.exp %112 : vector<2x32xf32>
    %cst_37 = arith.constant 1.000000e+00 : f32
    %114 = vector.broadcast %cst_37 : f32 to vector<2x32xf32>
    %115 = arith.addf %114, %113 : vector<2x32xf32>
    %116 = arith.divf %114, %115 : vector<2x32xf32>
    %117 = vector.extract_strided_slice %110 {offsets = [0, 32], sizes = [2, 32], strides = [1, 1]} : vector<2x128xf32> to vector<2x32xf32>
    %118 = arith.negf %117 : vector<2x32xf32>
    %119 = math.exp %118 : vector<2x32xf32>
    %cst_38 = arith.constant 1.000000e+00 : f32
    %120 = vector.broadcast %cst_38 : f32 to vector<2x32xf32>
    %121 = arith.addf %120, %119 : vector<2x32xf32>
    %122 = arith.divf %120, %121 : vector<2x32xf32>
    %123 = vector.extract_strided_slice %110 {offsets = [0, 64], sizes = [2, 32], strides = [1, 1]} : vector<2x128xf32> to vector<2x32xf32>
    %124 = math.tanh %123 : vector<2x32xf32>
    %125 = vector.extract_strided_slice %110 {offsets = [0, 96], sizes = [2, 32], strides = [1, 1]} : vector<2x128xf32> to vector<2x32xf32>
    %126 = arith.negf %125 : vector<2x32xf32>
    %127 = math.exp %126 : vector<2x32xf32>
    %cst_39 = arith.constant 1.000000e+00 : f32
    %128 = vector.broadcast %cst_39 : f32 to vector<2x32xf32>
    %129 = arith.addf %128, %127 : vector<2x32xf32>
    %130 = arith.divf %128, %129 : vector<2x32xf32>
    %131 = arith.mulf %122, %100 : vector<2x32xf32>
    %132 = arith.mulf %116, %124 : vector<2x32xf32>
    %133 = arith.addf %131, %132 : vector<2x32xf32>
    %134 = math.tanh %133 : vector<2x32xf32>
    %135 = arith.mulf %130, %134 : vector<2x32xf32>
    %c6 = arith.constant 6 : index
    %c0_40 = arith.constant 0 : index
    %136 = vector.load %arg13[%c6, %c0_40] : memref<16x32xf32, #tpu.memory_space<vmem>>, vector<2x32xf32>
    tpu.vector_store %arg13[%c6, %c0_40], %135 {strides = array<i32>} : memref<16x32xf32, #tpu.memory_space<vmem>>, vector<2x32xf32>,
    %c4_41 = arith.constant 4 : index
    %c0_42 = arith.constant 0 : index
    %c0_43 = arith.constant 0 : index
    %137 = vector.load %arg1[%c4_41, %c0_42, %c0_43] : memref<8x2x16xf32, #tpu.memory_space<vmem>>, vector<1x2x16xf32>
    %138 = vector.shape_cast %137 : vector<1x2x16xf32> to vector<2x16xf32>
    %cst_44 = arith.constant dense<0.000000e+00> : vector<2x128xf32>
    %139 = tpu.matmul %138, %0, %cst_44 {dimension_numbers = #tpu.dot_dimension_numbers<[1], [0], [0], [1], [0, 0, 1, 1], [], []>} : vector<2x16xf32>, vector<16x128xf32>, vector<2x128xf32> -> vector<2x128xf32>
    %cst_45 = arith.constant dense<0.000000e+00> : vector<2x128xf32>
    %140 = tpu.matmul %135, %1, %cst_45 {dimension_numbers = #tpu.dot_dimension_numbers<[1], [0], [0], [1], [0, 0, 1, 1], [], []>} : vector<2x32xf32>, vector<32x128xf32>, vector<2x128xf32> -> vector<2x128xf32>
    %141 = arith.addf %139, %140 : vector<2x128xf32>
    %142 = vector.broadcast %2 : vector<1x128xf32> to vector<2x128xf32>
    %143 = arith.addf %141, %142 : vector<2x128xf32>
    %144 = vector.extract_strided_slice %143 {offsets = [0, 0], sizes = [2, 32], strides = [1, 1]} : vector<2x128xf32> to vector<2x32xf32>
    %145 = arith.negf %144 : vector<2x32xf32>
    %146 = math.exp %145 : vector<2x32xf32>
    %cst_46 = arith.constant 1.000000e+00 : f32
    %147 = vector.broadcast %cst_46 : f32 to vector<2x32xf32>
    %148 = arith.addf %147, %146 : vector<2x32xf32>
    %149 = arith.divf %147, %148 : vector<2x32xf32>
    %150 = vector.extract_strided_slice %143 {offsets = [0, 32], sizes = [2, 32], strides = [1, 1]} : vector<2x128xf32> to vector<2x32xf32>
    %151 = arith.negf %150 : vector<2x32xf32>
    %152 = math.exp %151 : vector<2x32xf32>
    %cst_47 = arith.constant 1.000000e+00 : f32
    %153 = vector.broadcast %cst_47 : f32 to vector<2x32xf32>
    %154 = arith.addf %153, %152 : vector<2x32xf32>
    %155 = arith.divf %153, %154 : vector<2x32xf32>
    %156 = vector.extract_strided_slice %143 {offsets = [0, 64], sizes = [2, 32], strides = [1, 1]} : vector<2x128xf32> to vector<2x32xf32>
    %157 = math.tanh %156 : vector<2x32xf32>
    %158 = vector.extract_strided_slice %143 {offsets = [0, 96], sizes = [2, 32], strides = [1, 1]} : vector<2x128xf32> to vector<2x32xf32>
    %159 = arith.negf %158 : vector<2x32xf32>
    %160 = math.exp %159 : vector<2x32xf32>
    %cst_48 = arith.constant 1.000000e+00 : f32
    %161 = vector.broadcast %cst_48 : f32 to vector<2x32xf32>
    %162 = arith.addf %161, %160 : vector<2x32xf32>
    %163 = arith.divf %161, %162 : vector<2x32xf32>
    %164 = arith.mulf %155, %133 : vector<2x32xf32>
    %165 = arith.mulf %149, %157 : vector<2x32xf32>
    %166 = arith.addf %164, %165 : vector<2x32xf32>
    %167 = math.tanh %166 : vector<2x32xf32>
    %168 = arith.mulf %163, %167 : vector<2x32xf32>
    %c8 = arith.constant 8 : index
    %c0_49 = arith.constant 0 : index
    %169 = vector.load %arg13[%c8, %c0_49] : memref<16x32xf32, #tpu.memory_space<vmem>>, vector<2x32xf32>
    tpu.vector_store %arg13[%c8, %c0_49], %168 {strides = array<i32>} : memref<16x32xf32, #tpu.memory_space<vmem>>, vector<2x32xf32>,
    %c5 = arith.constant 5 : index
    %c0_50 = arith.constant 0 : index
    %c0_51 = arith.constant 0 : index
    %170 = vector.load %arg1[%c5, %c0_50, %c0_51] : memref<8x2x16xf32, #tpu.memory_space<vmem>>, vector<1x2x16xf32>
    %171 = vector.shape_cast %170 : vector<1x2x16xf32> to vector<2x16xf32>
    %cst_52 = arith.constant dense<0.000000e+00> : vector<2x128xf32>
    %172 = tpu.matmul %171, %0, %cst_52 {dimension_numbers = #tpu.dot_dimension_numbers<[1], [0], [0], [1], [0, 0, 1, 1], [], []>} : vector<2x16xf32>, vector<16x128xf32>, vector<2x128xf32> -> vector<2x128xf32>
    %cst_53 = arith.constant dense<0.000000e+00> : vector<2x128xf32>
    %173 = tpu.matmul %168, %1, %cst_53 {dimension_numbers = #tpu.dot_dimension_numbers<[1], [0], [0], [1], [0, 0, 1, 1], [], []>} : vector<2x32xf32>, vector<32x128xf32>, vector<2x128xf32> -> vector<2x128xf32>
    %174 = arith.addf %172, %173 : vector<2x128xf32>
    %175 = vector.broadcast %2 : vector<1x128xf32> to vector<2x128xf32>
    %176 = arith.addf %174, %175 : vector<2x128xf32>
    %177 = vector.extract_strided_slice %176 {offsets = [0, 0], sizes = [2, 32], strides = [1, 1]} : vector<2x128xf32> to vector<2x32xf32>
    %178 = arith.negf %177 : vector<2x32xf32>
    %179 = math.exp %178 : vector<2x32xf32>
    %cst_54 = arith.constant 1.000000e+00 : f32
    %180 = vector.broadcast %cst_54 : f32 to vector<2x32xf32>
    %181 = arith.addf %180, %179 : vector<2x32xf32>
    %182 = arith.divf %180, %181 : vector<2x32xf32>
    %183 = vector.extract_strided_slice %176 {offsets = [0, 32], sizes = [2, 32], strides = [1, 1]} : vector<2x128xf32> to vector<2x32xf32>
    %184 = arith.negf %183 : vector<2x32xf32>
    %185 = math.exp %184 : vector<2x32xf32>
    %cst_55 = arith.constant 1.000000e+00 : f32
    %186 = vector.broadcast %cst_55 : f32 to vector<2x32xf32>
    %187 = arith.addf %186, %185 : vector<2x32xf32>
    %188 = arith.divf %186, %187 : vector<2x32xf32>
    %189 = vector.extract_strided_slice %176 {offsets = [0, 64], sizes = [2, 32], strides = [1, 1]} : vector<2x128xf32> to vector<2x32xf32>
    %190 = math.tanh %189 : vector<2x32xf32>
    %191 = vector.extract_strided_slice %176 {offsets = [0, 96], sizes = [2, 32], strides = [1, 1]} : vector<2x128xf32> to vector<2x32xf32>
    %192 = arith.negf %191 : vector<2x32xf32>
    %193 = math.exp %192 : vector<2x32xf32>
    %cst_56 = arith.constant 1.000000e+00 : f32
    %194 = vector.broadcast %cst_56 : f32 to vector<2x32xf32>
    %195 = arith.addf %194, %193 : vector<2x32xf32>
    %196 = arith.divf %194, %195 : vector<2x32xf32>
    %197 = arith.mulf %188, %166 : vector<2x32xf32>
    %198 = arith.mulf %182, %190 : vector<2x32xf32>
    %199 = arith.addf %197, %198 : vector<2x32xf32>
    %200 = math.tanh %199 : vector<2x32xf32>
    %201 = arith.mulf %196, %200 : vector<2x32xf32>
    %c10 = arith.constant 10 : index
    %c0_57 = arith.constant 0 : index
    %202 = vector.load %arg13[%c10, %c0_57] : memref<16x32xf32, #tpu.memory_space<vmem>>, vector<2x32xf32>
    tpu.vector_store %arg13[%c10, %c0_57], %201 {strides = array<i32>} : memref<16x32xf32, #tpu.memory_space<vmem>>, vector<2x32xf32>,
    %c6_58 = arith.constant 6 : index
    %c0_59 = arith.constant 0 : index
    %c0_60 = arith.constant 0 : index
    %203 = vector.load %arg1[%c6_58, %c0_59, %c0_60] : memref<8x2x16xf32, #tpu.memory_space<vmem>>, vector<1x2x16xf32>
    %204 = vector.shape_cast %203 : vector<1x2x16xf32> to vector<2x16xf32>
    %cst_61 = arith.constant dense<0.000000e+00> : vector<2x128xf32>
    %205 = tpu.matmul %204, %0, %cst_61 {dimension_numbers = #tpu.dot_dimension_numbers<[1], [0], [0], [1], [0, 0, 1, 1], [], []>} : vector<2x16xf32>, vector<16x128xf32>, vector<2x128xf32> -> vector<2x128xf32>
    %cst_62 = arith.constant dense<0.000000e+00> : vector<2x128xf32>
    %206 = tpu.matmul %201, %1, %cst_62 {dimension_numbers = #tpu.dot_dimension_numbers<[1], [0], [0], [1], [0, 0, 1, 1], [], []>} : vector<2x32xf32>, vector<32x128xf32>, vector<2x128xf32> -> vector<2x128xf32>
    %207 = arith.addf %205, %206 : vector<2x128xf32>
    %208 = vector.broadcast %2 : vector<1x128xf32> to vector<2x128xf32>
    %209 = arith.addf %207, %208 : vector<2x128xf32>
    %210 = vector.extract_strided_slice %209 {offsets = [0, 0], sizes = [2, 32], strides = [1, 1]} : vector<2x128xf32> to vector<2x32xf32>
    %211 = arith.negf %210 : vector<2x32xf32>
    %212 = math.exp %211 : vector<2x32xf32>
    %cst_63 = arith.constant 1.000000e+00 : f32
    %213 = vector.broadcast %cst_63 : f32 to vector<2x32xf32>
    %214 = arith.addf %213, %212 : vector<2x32xf32>
    %215 = arith.divf %213, %214 : vector<2x32xf32>
    %216 = vector.extract_strided_slice %209 {offsets = [0, 32], sizes = [2, 32], strides = [1, 1]} : vector<2x128xf32> to vector<2x32xf32>
    %217 = arith.negf %216 : vector<2x32xf32>
    %218 = math.exp %217 : vector<2x32xf32>
    %cst_64 = arith.constant 1.000000e+00 : f32
    %219 = vector.broadcast %cst_64 : f32 to vector<2x32xf32>
    %220 = arith.addf %219, %218 : vector<2x32xf32>
    %221 = arith.divf %219, %220 : vector<2x32xf32>
    %222 = vector.extract_strided_slice %209 {offsets = [0, 64], sizes = [2, 32], strides = [1, 1]} : vector<2x128xf32> to vector<2x32xf32>
    %223 = math.tanh %222 : vector<2x32xf32>
    %224 = vector.extract_strided_slice %209 {offsets = [0, 96], sizes = [2, 32], strides = [1, 1]} : vector<2x128xf32> to vector<2x32xf32>
    %225 = arith.negf %224 : vector<2x32xf32>
    %226 = math.exp %225 : vector<2x32xf32>
    %cst_65 = arith.constant 1.000000e+00 : f32
    %227 = vector.broadcast %cst_65 : f32 to vector<2x32xf32>
    %228 = arith.addf %227, %226 : vector<2x32xf32>
    %229 = arith.divf %227, %228 : vector<2x32xf32>
    %230 = arith.mulf %221, %199 : vector<2x32xf32>
    %231 = arith.mulf %215, %223 : vector<2x32xf32>
    %232 = arith.addf %230, %231 : vector<2x32xf32>
    %233 = math.tanh %232 : vector<2x32xf32>
    %234 = arith.mulf %229, %233 : vector<2x32xf32>
    %c12 = arith.constant 12 : index
    %c0_66 = arith.constant 0 : index
    %235 = vector.load %arg13[%c12, %c0_66] : memref<16x32xf32, #tpu.memory_space<vmem>>, vector<2x32xf32>
    tpu.vector_store %arg13[%c12, %c0_66], %234 {strides = array<i32>} : memref<16x32xf32, #tpu.memory_space<vmem>>, vector<2x32xf32>,
    %c7 = arith.constant 7 : index
    %c0_67 = arith.constant 0 : index
    %c0_68 = arith.constant 0 : index
    %236 = vector.load %arg1[%c7, %c0_67, %c0_68] : memref<8x2x16xf32, #tpu.memory_space<vmem>>, vector<1x2x16xf32>
    %237 = vector.shape_cast %236 : vector<1x2x16xf32> to vector<2x16xf32>
    %cst_69 = arith.constant dense<0.000000e+00> : vector<2x128xf32>
    %238 = tpu.matmul %237, %0, %cst_69 {dimension_numbers = #tpu.dot_dimension_numbers<[1], [0], [0], [1], [0, 0, 1, 1], [], []>} : vector<2x16xf32>, vector<16x128xf32>, vector<2x128xf32> -> vector<2x128xf32>
    %cst_70 = arith.constant dense<0.000000e+00> : vector<2x128xf32>
    %239 = tpu.matmul %234, %1, %cst_70 {dimension_numbers = #tpu.dot_dimension_numbers<[1], [0], [0], [1], [0, 0, 1, 1], [], []>} : vector<2x32xf32>, vector<32x128xf32>, vector<2x128xf32> -> vector<2x128xf32>
    %240 = arith.addf %238, %239 : vector<2x128xf32>
    %241 = vector.broadcast %2 : vector<1x128xf32> to vector<2x128xf32>
    %242 = arith.addf %240, %241 : vector<2x128xf32>
    %243 = vector.extract_strided_slice %242 {offsets = [0, 0], sizes = [2, 32], strides = [1, 1]} : vector<2x128xf32> to vector<2x32xf32>
    %244 = arith.negf %243 : vector<2x32xf32>
    %245 = math.exp %244 : vector<2x32xf32>
    %cst_71 = arith.constant 1.000000e+00 : f32
    %246 = vector.broadcast %cst_71 : f32 to vector<2x32xf32>
    %247 = arith.addf %246, %245 : vector<2x32xf32>
    %248 = arith.divf %246, %247 : vector<2x32xf32>
    %249 = vector.extract_strided_slice %242 {offsets = [0, 32], sizes = [2, 32], strides = [1, 1]} : vector<2x128xf32> to vector<2x32xf32>
    %250 = arith.negf %249 : vector<2x32xf32>
    %251 = math.exp %250 : vector<2x32xf32>
    %cst_72 = arith.constant 1.000000e+00 : f32
    %252 = vector.broadcast %cst_72 : f32 to vector<2x32xf32>
    %253 = arith.addf %252, %251 : vector<2x32xf32>
    %254 = arith.divf %252, %253 : vector<2x32xf32>
    %255 = vector.extract_strided_slice %242 {offsets = [0, 64], sizes = [2, 32], strides = [1, 1]} : vector<2x128xf32> to vector<2x32xf32>
    %256 = math.tanh %255 : vector<2x32xf32>
    %257 = vector.extract_strided_slice %242 {offsets = [0, 96], sizes = [2, 32], strides = [1, 1]} : vector<2x128xf32> to vector<2x32xf32>
    %258 = arith.negf %257 : vector<2x32xf32>
    %259 = math.exp %258 : vector<2x32xf32>
    %cst_73 = arith.constant 1.000000e+00 : f32
    %260 = vector.broadcast %cst_73 : f32 to vector<2x32xf32>
    %261 = arith.addf %260, %259 : vector<2x32xf32>
    %262 = arith.divf %260, %261 : vector<2x32xf32>
    %263 = arith.mulf %254, %232 : vector<2x32xf32>
    %264 = arith.mulf %248, %256 : vector<2x32xf32>
    %265 = arith.addf %263, %264 : vector<2x32xf32>
    %266 = math.tanh %265 : vector<2x32xf32>
    %267 = arith.mulf %262, %266 : vector<2x32xf32>
    %c14 = arith.constant 14 : index
    %c0_74 = arith.constant 0 : index
    %268 = vector.load %arg13[%c14, %c0_74] : memref<16x32xf32, #tpu.memory_space<vmem>>, vector<2x32xf32>
    tpu.vector_store %arg13[%c14, %c0_74], %267 {strides = array<i32>} : memref<16x32xf32, #tpu.memory_space<vmem>>, vector<2x32xf32>,
    %c0_75 = arith.constant 0 : index
    %c0_76 = arith.constant 0 : index
    %269 = vector.load %arg5[%c0_75, %c0_76] : memref<32x128xf32, #tpu.memory_space<vmem>>, vector<32x128xf32>
    %c0_77 = arith.constant 0 : index
    %c0_78 = arith.constant 0 : index
    %270 = vector.load %arg6[%c0_77, %c0_78] : memref<32x128xf32, #tpu.memory_space<vmem>>, vector<32x128xf32>
    %c0_79 = arith.constant 0 : index
    %c0_80 = arith.constant 0 : index
    %271 = vector.load %arg7[%c0_79, %c0_80] : memref<1x128xf32, #tpu.memory_space<vmem>>, vector<1x128xf32>
    %cst_81 = arith.constant 0.000000e+00 : f32
    %272 = vector.broadcast %cst_81 : f32 to vector<2x32xf32>
    %cst_82 = arith.constant 0.000000e+00 : f32
    %273 = vector.broadcast %cst_82 : f32 to vector<2x32xf32>
    %c0_83 = arith.constant 0 : index
    %c0_84 = arith.constant 0 : index
    %274 = vector.load %arg13[%c0_83, %c0_84] : memref<16x32xf32, #tpu.memory_space<vmem>>, vector<2x32xf32>
    %cst_85 = arith.constant dense<0.000000e+00> : vector<2x128xf32>
    %275 = tpu.matmul %274, %269, %cst_85 {dimension_numbers = #tpu.dot_dimension_numbers<[1], [0], [0], [1], [0, 0, 1, 1], [], []>} : vector<2x32xf32>, vector<32x128xf32>, vector<2x128xf32> -> vector<2x128xf32>
    %cst_86 = arith.constant dense<0.000000e+00> : vector<2x128xf32>
    %276 = tpu.matmul %272, %270, %cst_86 {dimension_numbers = #tpu.dot_dimension_numbers<[1], [0], [0], [1], [0, 0, 1, 1], [], []>} : vector<2x32xf32>, vector<32x128xf32>, vector<2x128xf32> -> vector<2x128xf32>
    %277 = arith.addf %275, %276 : vector<2x128xf32>
    %278 = vector.broadcast %271 : vector<1x128xf32> to vector<2x128xf32>
    %279 = arith.addf %277, %278 : vector<2x128xf32>
    %280 = vector.extract_strided_slice %279 {offsets = [0, 0], sizes = [2, 32], strides = [1, 1]} : vector<2x128xf32> to vector<2x32xf32>
    %281 = arith.negf %280 : vector<2x32xf32>
    %282 = math.exp %281 : vector<2x32xf32>
    %cst_87 = arith.constant 1.000000e+00 : f32
    %283 = vector.broadcast %cst_87 : f32 to vector<2x32xf32>
    %284 = arith.addf %283, %282 : vector<2x32xf32>
    %285 = arith.divf %283, %284 : vector<2x32xf32>
    %286 = vector.extract_strided_slice %279 {offsets = [0, 32], sizes = [2, 32], strides = [1, 1]} : vector<2x128xf32> to vector<2x32xf32>
    %287 = arith.negf %286 : vector<2x32xf32>
    %288 = math.exp %287 : vector<2x32xf32>
    %cst_88 = arith.constant 1.000000e+00 : f32
    %289 = vector.broadcast %cst_88 : f32 to vector<2x32xf32>
    %290 = arith.addf %289, %288 : vector<2x32xf32>
    %291 = arith.divf %289, %290 : vector<2x32xf32>
    %292 = vector.extract_strided_slice %279 {offsets = [0, 64], sizes = [2, 32], strides = [1, 1]} : vector<2x128xf32> to vector<2x32xf32>
    %293 = math.tanh %292 : vector<2x32xf32>
    %294 = vector.extract_strided_slice %279 {offsets = [0, 96], sizes = [2, 32], strides = [1, 1]} : vector<2x128xf32> to vector<2x32xf32>
    %295 = arith.negf %294 : vector<2x32xf32>
    %296 = math.exp %295 : vector<2x32xf32>
    %cst_89 = arith.constant 1.000000e+00 : f32
    %297 = vector.broadcast %cst_89 : f32 to vector<2x32xf32>
    %298 = arith.addf %297, %296 : vector<2x32xf32>
    %299 = arith.divf %297, %298 : vector<2x32xf32>
    %300 = arith.mulf %291, %273 : vector<2x32xf32>
    %301 = arith.mulf %285, %293 : vector<2x32xf32>
    %302 = arith.addf %300, %301 : vector<2x32xf32>
    %303 = math.tanh %302 : vector<2x32xf32>
    %304 = arith.mulf %299, %303 : vector<2x32xf32>
    %c0_90 = arith.constant 0 : index
    %c0_91 = arith.constant 0 : index
    %305 = vector.load %arg13[%c0_90, %c0_91] : memref<16x32xf32, #tpu.memory_space<vmem>>, vector<2x32xf32>
    tpu.vector_store %arg13[%c0_90, %c0_91], %304 {strides = array<i32>} : memref<16x32xf32, #tpu.memory_space<vmem>>, vector<2x32xf32>,
    %c2_92 = arith.constant 2 : index
    %c0_93 = arith.constant 0 : index
    %306 = vector.load %arg13[%c2_92, %c0_93] : memref<16x32xf32, #tpu.memory_space<vmem>>, vector<2x32xf32>
    %cst_94 = arith.constant dense<0.000000e+00> : vector<2x128xf32>
    %307 = tpu.matmul %306, %269, %cst_94 {dimension_numbers = #tpu.dot_dimension_numbers<[1], [0], [0], [1], [0, 0, 1, 1], [], []>} : vector<2x32xf32>, vector<32x128xf32>, vector<2x128xf32> -> vector<2x128xf32>
    %cst_95 = arith.constant dense<0.000000e+00> : vector<2x128xf32>
    %308 = tpu.matmul %304, %270, %cst_95 {dimension_numbers = #tpu.dot_dimension_numbers<[1], [0], [0], [1], [0, 0, 1, 1], [], []>} : vector<2x32xf32>, vector<32x128xf32>, vector<2x128xf32> -> vector<2x128xf32>
    %309 = arith.addf %307, %308 : vector<2x128xf32>
    %310 = vector.broadcast %271 : vector<1x128xf32> to vector<2x128xf32>
    %311 = arith.addf %309, %310 : vector<2x128xf32>
    %312 = vector.extract_strided_slice %311 {offsets = [0, 0], sizes = [2, 32], strides = [1, 1]} : vector<2x128xf32> to vector<2x32xf32>
    %313 = arith.negf %312 : vector<2x32xf32>
    %314 = math.exp %313 : vector<2x32xf32>
    %cst_96 = arith.constant 1.000000e+00 : f32
    %315 = vector.broadcast %cst_96 : f32 to vector<2x32xf32>
    %316 = arith.addf %315, %314 : vector<2x32xf32>
    %317 = arith.divf %315, %316 : vector<2x32xf32>
    %318 = vector.extract_strided_slice %311 {offsets = [0, 32], sizes = [2, 32], strides = [1, 1]} : vector<2x128xf32> to vector<2x32xf32>
    %319 = arith.negf %318 : vector<2x32xf32>
    %320 = math.exp %319 : vector<2x32xf32>
    %cst_97 = arith.constant 1.000000e+00 : f32
    %321 = vector.broadcast %cst_97 : f32 to vector<2x32xf32>
    %322 = arith.addf %321, %320 : vector<2x32xf32>
    %323 = arith.divf %321, %322 : vector<2x32xf32>
    %324 = vector.extract_strided_slice %311 {offsets = [0, 64], sizes = [2, 32], strides = [1, 1]} : vector<2x128xf32> to vector<2x32xf32>
    %325 = math.tanh %324 : vector<2x32xf32>
    %326 = vector.extract_strided_slice %311 {offsets = [0, 96], sizes = [2, 32], strides = [1, 1]} : vector<2x128xf32> to vector<2x32xf32>
    %327 = arith.negf %326 : vector<2x32xf32>
    %328 = math.exp %327 : vector<2x32xf32>
    %cst_98 = arith.constant 1.000000e+00 : f32
    %329 = vector.broadcast %cst_98 : f32 to vector<2x32xf32>
    %330 = arith.addf %329, %328 : vector<2x32xf32>
    %331 = arith.divf %329, %330 : vector<2x32xf32>
    %332 = arith.mulf %323, %302 : vector<2x32xf32>
    %333 = arith.mulf %317, %325 : vector<2x32xf32>
    %334 = arith.addf %332, %333 : vector<2x32xf32>
    %335 = math.tanh %334 : vector<2x32xf32>
    %336 = arith.mulf %331, %335 : vector<2x32xf32>
    %c2_99 = arith.constant 2 : index
    %c0_100 = arith.constant 0 : index
    %337 = vector.load %arg13[%c2_99, %c0_100] : memref<16x32xf32, #tpu.memory_space<vmem>>, vector<2x32xf32>
    tpu.vector_store %arg13[%c2_99, %c0_100], %336 {strides = array<i32>} : memref<16x32xf32, #tpu.memory_space<vmem>>, vector<2x32xf32>,
    %c4_101 = arith.constant 4 : index
    %c0_102 = arith.constant 0 : index
    %338 = vector.load %arg13[%c4_101, %c0_102] : memref<16x32xf32, #tpu.memory_space<vmem>>, vector<2x32xf32>
    %cst_103 = arith.constant dense<0.000000e+00> : vector<2x128xf32>
    %339 = tpu.matmul %338, %269, %cst_103 {dimension_numbers = #tpu.dot_dimension_numbers<[1], [0], [0], [1], [0, 0, 1, 1], [], []>} : vector<2x32xf32>, vector<32x128xf32>, vector<2x128xf32> -> vector<2x128xf32>
    %cst_104 = arith.constant dense<0.000000e+00> : vector<2x128xf32>
    %340 = tpu.matmul %336, %270, %cst_104 {dimension_numbers = #tpu.dot_dimension_numbers<[1], [0], [0], [1], [0, 0, 1, 1], [], []>} : vector<2x32xf32>, vector<32x128xf32>, vector<2x128xf32> -> vector<2x128xf32>
    %341 = arith.addf %339, %340 : vector<2x128xf32>
    %342 = vector.broadcast %271 : vector<1x128xf32> to vector<2x128xf32>
    %343 = arith.addf %341, %342 : vector<2x128xf32>
    %344 = vector.extract_strided_slice %343 {offsets = [0, 0], sizes = [2, 32], strides = [1, 1]} : vector<2x128xf32> to vector<2x32xf32>
    %345 = arith.negf %344 : vector<2x32xf32>
    %346 = math.exp %345 : vector<2x32xf32>
    %cst_105 = arith.constant 1.000000e+00 : f32
    %347 = vector.broadcast %cst_105 : f32 to vector<2x32xf32>
    %348 = arith.addf %347, %346 : vector<2x32xf32>
    %349 = arith.divf %347, %348 : vector<2x32xf32>
    %350 = vector.extract_strided_slice %343 {offsets = [0, 32], sizes = [2, 32], strides = [1, 1]} : vector<2x128xf32> to vector<2x32xf32>
    %351 = arith.negf %350 : vector<2x32xf32>
    %352 = math.exp %351 : vector<2x32xf32>
    %cst_106 = arith.constant 1.000000e+00 : f32
    %353 = vector.broadcast %cst_106 : f32 to vector<2x32xf32>
    %354 = arith.addf %353, %352 : vector<2x32xf32>
    %355 = arith.divf %353, %354 : vector<2x32xf32>
    %356 = vector.extract_strided_slice %343 {offsets = [0, 64], sizes = [2, 32], strides = [1, 1]} : vector<2x128xf32> to vector<2x32xf32>
    %357 = math.tanh %356 : vector<2x32xf32>
    %358 = vector.extract_strided_slice %343 {offsets = [0, 96], sizes = [2, 32], strides = [1, 1]} : vector<2x128xf32> to vector<2x32xf32>
    %359 = arith.negf %358 : vector<2x32xf32>
    %360 = math.exp %359 : vector<2x32xf32>
    %cst_107 = arith.constant 1.000000e+00 : f32
    %361 = vector.broadcast %cst_107 : f32 to vector<2x32xf32>
    %362 = arith.addf %361, %360 : vector<2x32xf32>
    %363 = arith.divf %361, %362 : vector<2x32xf32>
    %364 = arith.mulf %355, %334 : vector<2x32xf32>
    %365 = arith.mulf %349, %357 : vector<2x32xf32>
    %366 = arith.addf %364, %365 : vector<2x32xf32>
    %367 = math.tanh %366 : vector<2x32xf32>
    %368 = arith.mulf %363, %367 : vector<2x32xf32>
    %c4_108 = arith.constant 4 : index
    %c0_109 = arith.constant 0 : index
    %369 = vector.load %arg13[%c4_108, %c0_109] : memref<16x32xf32, #tpu.memory_space<vmem>>, vector<2x32xf32>
    tpu.vector_store %arg13[%c4_108, %c0_109], %368 {strides = array<i32>} : memref<16x32xf32, #tpu.memory_space<vmem>>, vector<2x32xf32>,
    %c6_110 = arith.constant 6 : index
    %c0_111 = arith.constant 0 : index
    %370 = vector.load %arg13[%c6_110, %c0_111] : memref<16x32xf32, #tpu.memory_space<vmem>>, vector<2x32xf32>
    %cst_112 = arith.constant dense<0.000000e+00> : vector<2x128xf32>
    %371 = tpu.matmul %370, %269, %cst_112 {dimension_numbers = #tpu.dot_dimension_numbers<[1], [0], [0], [1], [0, 0, 1, 1], [], []>} : vector<2x32xf32>, vector<32x128xf32>, vector<2x128xf32> -> vector<2x128xf32>
    %cst_113 = arith.constant dense<0.000000e+00> : vector<2x128xf32>
    %372 = tpu.matmul %368, %270, %cst_113 {dimension_numbers = #tpu.dot_dimension_numbers<[1], [0], [0], [1], [0, 0, 1, 1], [], []>} : vector<2x32xf32>, vector<32x128xf32>, vector<2x128xf32> -> vector<2x128xf32>
    %373 = arith.addf %371, %372 : vector<2x128xf32>
    %374 = vector.broadcast %271 : vector<1x128xf32> to vector<2x128xf32>
    %375 = arith.addf %373, %374 : vector<2x128xf32>
    %376 = vector.extract_strided_slice %375 {offsets = [0, 0], sizes = [2, 32], strides = [1, 1]} : vector<2x128xf32> to vector<2x32xf32>
    %377 = arith.negf %376 : vector<2x32xf32>
    %378 = math.exp %377 : vector<2x32xf32>
    %cst_114 = arith.constant 1.000000e+00 : f32
    %379 = vector.broadcast %cst_114 : f32 to vector<2x32xf32>
    %380 = arith.addf %379, %378 : vector<2x32xf32>
    %381 = arith.divf %379, %380 : vector<2x32xf32>
    %382 = vector.extract_strided_slice %375 {offsets = [0, 32], sizes = [2, 32], strides = [1, 1]} : vector<2x128xf32> to vector<2x32xf32>
    %383 = arith.negf %382 : vector<2x32xf32>
    %384 = math.exp %383 : vector<2x32xf32>
    %cst_115 = arith.constant 1.000000e+00 : f32
    %385 = vector.broadcast %cst_115 : f32 to vector<2x32xf32>
    %386 = arith.addf %385, %384 : vector<2x32xf32>
    %387 = arith.divf %385, %386 : vector<2x32xf32>
    %388 = vector.extract_strided_slice %375 {offsets = [0, 64], sizes = [2, 32], strides = [1, 1]} : vector<2x128xf32> to vector<2x32xf32>
    %389 = math.tanh %388 : vector<2x32xf32>
    %390 = vector.extract_strided_slice %375 {offsets = [0, 96], sizes = [2, 32], strides = [1, 1]} : vector<2x128xf32> to vector<2x32xf32>
    %391 = arith.negf %390 : vector<2x32xf32>
    %392 = math.exp %391 : vector<2x32xf32>
    %cst_116 = arith.constant 1.000000e+00 : f32
    %393 = vector.broadcast %cst_116 : f32 to vector<2x32xf32>
    %394 = arith.addf %393, %392 : vector<2x32xf32>
    %395 = arith.divf %393, %394 : vector<2x32xf32>
    %396 = arith.mulf %387, %366 : vector<2x32xf32>
    %397 = arith.mulf %381, %389 : vector<2x32xf32>
    %398 = arith.addf %396, %397 : vector<2x32xf32>
    %399 = math.tanh %398 : vector<2x32xf32>
    %400 = arith.mulf %395, %399 : vector<2x32xf32>
    %c6_117 = arith.constant 6 : index
    %c0_118 = arith.constant 0 : index
    %401 = vector.load %arg13[%c6_117, %c0_118] : memref<16x32xf32, #tpu.memory_space<vmem>>, vector<2x32xf32>
    tpu.vector_store %arg13[%c6_117, %c0_118], %400 {strides = array<i32>} : memref<16x32xf32, #tpu.memory_space<vmem>>, vector<2x32xf32>,
    %c8_119 = arith.constant 8 : index
    %c0_120 = arith.constant 0 : index
    %402 = vector.load %arg13[%c8_119, %c0_120] : memref<16x32xf32, #tpu.memory_space<vmem>>, vector<2x32xf32>
    %cst_121 = arith.constant dense<0.000000e+00> : vector<2x128xf32>
    %403 = tpu.matmul %402, %269, %cst_121 {dimension_numbers = #tpu.dot_dimension_numbers<[1], [0], [0], [1], [0, 0, 1, 1], [], []>} : vector<2x32xf32>, vector<32x128xf32>, vector<2x128xf32> -> vector<2x128xf32>
    %cst_122 = arith.constant dense<0.000000e+00> : vector<2x128xf32>
    %404 = tpu.matmul %400, %270, %cst_122 {dimension_numbers = #tpu.dot_dimension_numbers<[1], [0], [0], [1], [0, 0, 1, 1], [], []>} : vector<2x32xf32>, vector<32x128xf32>, vector<2x128xf32> -> vector<2x128xf32>
    %405 = arith.addf %403, %404 : vector<2x128xf32>
    %406 = vector.broadcast %271 : vector<1x128xf32> to vector<2x128xf32>
    %407 = arith.addf %405, %406 : vector<2x128xf32>
    %408 = vector.extract_strided_slice %407 {offsets = [0, 0], sizes = [2, 32], strides = [1, 1]} : vector<2x128xf32> to vector<2x32xf32>
    %409 = arith.negf %408 : vector<2x32xf32>
    %410 = math.exp %409 : vector<2x32xf32>
    %cst_123 = arith.constant 1.000000e+00 : f32
    %411 = vector.broadcast %cst_123 : f32 to vector<2x32xf32>
    %412 = arith.addf %411, %410 : vector<2x32xf32>
    %413 = arith.divf %411, %412 : vector<2x32xf32>
    %414 = vector.extract_strided_slice %407 {offsets = [0, 32], sizes = [2, 32], strides = [1, 1]} : vector<2x128xf32> to vector<2x32xf32>
    %415 = arith.negf %414 : vector<2x32xf32>
    %416 = math.exp %415 : vector<2x32xf32>
    %cst_124 = arith.constant 1.000000e+00 : f32
    %417 = vector.broadcast %cst_124 : f32 to vector<2x32xf32>
    %418 = arith.addf %417, %416 : vector<2x32xf32>
    %419 = arith.divf %417, %418 : vector<2x32xf32>
    %420 = vector.extract_strided_slice %407 {offsets = [0, 64], sizes = [2, 32], strides = [1, 1]} : vector<2x128xf32> to vector<2x32xf32>
    %421 = math.tanh %420 : vector<2x32xf32>
    %422 = vector.extract_strided_slice %407 {offsets = [0, 96], sizes = [2, 32], strides = [1, 1]} : vector<2x128xf32> to vector<2x32xf32>
    %423 = arith.negf %422 : vector<2x32xf32>
    %424 = math.exp %423 : vector<2x32xf32>
    %cst_125 = arith.constant 1.000000e+00 : f32
    %425 = vector.broadcast %cst_125 : f32 to vector<2x32xf32>
    %426 = arith.addf %425, %424 : vector<2x32xf32>
    %427 = arith.divf %425, %426 : vector<2x32xf32>
    %428 = arith.mulf %419, %398 : vector<2x32xf32>
    %429 = arith.mulf %413, %421 : vector<2x32xf32>
    %430 = arith.addf %428, %429 : vector<2x32xf32>
    %431 = math.tanh %430 : vector<2x32xf32>
    %432 = arith.mulf %427, %431 : vector<2x32xf32>
    %c8_126 = arith.constant 8 : index
    %c0_127 = arith.constant 0 : index
    %433 = vector.load %arg13[%c8_126, %c0_127] : memref<16x32xf32, #tpu.memory_space<vmem>>, vector<2x32xf32>
    tpu.vector_store %arg13[%c8_126, %c0_127], %432 {strides = array<i32>} : memref<16x32xf32, #tpu.memory_space<vmem>>, vector<2x32xf32>,
    %c10_128 = arith.constant 10 : index
    %c0_129 = arith.constant 0 : index
    %434 = vector.load %arg13[%c10_128, %c0_129] : memref<16x32xf32, #tpu.memory_space<vmem>>, vector<2x32xf32>
    %cst_130 = arith.constant dense<0.000000e+00> : vector<2x128xf32>
    %435 = tpu.matmul %434, %269, %cst_130 {dimension_numbers = #tpu.dot_dimension_numbers<[1], [0], [0], [1], [0, 0, 1, 1], [], []>} : vector<2x32xf32>, vector<32x128xf32>, vector<2x128xf32> -> vector<2x128xf32>
    %cst_131 = arith.constant dense<0.000000e+00> : vector<2x128xf32>
    %436 = tpu.matmul %432, %270, %cst_131 {dimension_numbers = #tpu.dot_dimension_numbers<[1], [0], [0], [1], [0, 0, 1, 1], [], []>} : vector<2x32xf32>, vector<32x128xf32>, vector<2x128xf32> -> vector<2x128xf32>
    %437 = arith.addf %435, %436 : vector<2x128xf32>
    %438 = vector.broadcast %271 : vector<1x128xf32> to vector<2x128xf32>
    %439 = arith.addf %437, %438 : vector<2x128xf32>
    %440 = vector.extract_strided_slice %439 {offsets = [0, 0], sizes = [2, 32], strides = [1, 1]} : vector<2x128xf32> to vector<2x32xf32>
    %441 = arith.negf %440 : vector<2x32xf32>
    %442 = math.exp %441 : vector<2x32xf32>
    %cst_132 = arith.constant 1.000000e+00 : f32
    %443 = vector.broadcast %cst_132 : f32 to vector<2x32xf32>
    %444 = arith.addf %443, %442 : vector<2x32xf32>
    %445 = arith.divf %443, %444 : vector<2x32xf32>
    %446 = vector.extract_strided_slice %439 {offsets = [0, 32], sizes = [2, 32], strides = [1, 1]} : vector<2x128xf32> to vector<2x32xf32>
    %447 = arith.negf %446 : vector<2x32xf32>
    %448 = math.exp %447 : vector<2x32xf32>
    %cst_133 = arith.constant 1.000000e+00 : f32
    %449 = vector.broadcast %cst_133 : f32 to vector<2x32xf32>
    %450 = arith.addf %449, %448 : vector<2x32xf32>
    %451 = arith.divf %449, %450 : vector<2x32xf32>
    %452 = vector.extract_strided_slice %439 {offsets = [0, 64], sizes = [2, 32], strides = [1, 1]} : vector<2x128xf32> to vector<2x32xf32>
    %453 = math.tanh %452 : vector<2x32xf32>
    %454 = vector.extract_strided_slice %439 {offsets = [0, 96], sizes = [2, 32], strides = [1, 1]} : vector<2x128xf32> to vector<2x32xf32>
    %455 = arith.negf %454 : vector<2x32xf32>
    %456 = math.exp %455 : vector<2x32xf32>
    %cst_134 = arith.constant 1.000000e+00 : f32
    %457 = vector.broadcast %cst_134 : f32 to vector<2x32xf32>
    %458 = arith.addf %457, %456 : vector<2x32xf32>
    %459 = arith.divf %457, %458 : vector<2x32xf32>
    %460 = arith.mulf %451, %430 : vector<2x32xf32>
    %461 = arith.mulf %445, %453 : vector<2x32xf32>
    %462 = arith.addf %460, %461 : vector<2x32xf32>
    %463 = math.tanh %462 : vector<2x32xf32>
    %464 = arith.mulf %459, %463 : vector<2x32xf32>
    %c10_135 = arith.constant 10 : index
    %c0_136 = arith.constant 0 : index
    %465 = vector.load %arg13[%c10_135, %c0_136] : memref<16x32xf32, #tpu.memory_space<vmem>>, vector<2x32xf32>
    tpu.vector_store %arg13[%c10_135, %c0_136], %464 {strides = array<i32>} : memref<16x32xf32, #tpu.memory_space<vmem>>, vector<2x32xf32>,
    %c12_137 = arith.constant 12 : index
    %c0_138 = arith.constant 0 : index
    %466 = vector.load %arg13[%c12_137, %c0_138] : memref<16x32xf32, #tpu.memory_space<vmem>>, vector<2x32xf32>
    %cst_139 = arith.constant dense<0.000000e+00> : vector<2x128xf32>
    %467 = tpu.matmul %466, %269, %cst_139 {dimension_numbers = #tpu.dot_dimension_numbers<[1], [0], [0], [1], [0, 0, 1, 1], [], []>} : vector<2x32xf32>, vector<32x128xf32>, vector<2x128xf32> -> vector<2x128xf32>
    %cst_140 = arith.constant dense<0.000000e+00> : vector<2x128xf32>
    %468 = tpu.matmul %464, %270, %cst_140 {dimension_numbers = #tpu.dot_dimension_numbers<[1], [0], [0], [1], [0, 0, 1, 1], [], []>} : vector<2x32xf32>, vector<32x128xf32>, vector<2x128xf32> -> vector<2x128xf32>
    %469 = arith.addf %467, %468 : vector<2x128xf32>
    %470 = vector.broadcast %271 : vector<1x128xf32> to vector<2x128xf32>
    %471 = arith.addf %469, %470 : vector<2x128xf32>
    %472 = vector.extract_strided_slice %471 {offsets = [0, 0], sizes = [2, 32], strides = [1, 1]} : vector<2x128xf32> to vector<2x32xf32>
    %473 = arith.negf %472 : vector<2x32xf32>
    %474 = math.exp %473 : vector<2x32xf32>
    %cst_141 = arith.constant 1.000000e+00 : f32
    %475 = vector.broadcast %cst_141 : f32 to vector<2x32xf32>
    %476 = arith.addf %475, %474 : vector<2x32xf32>
    %477 = arith.divf %475, %476 : vector<2x32xf32>
    %478 = vector.extract_strided_slice %471 {offsets = [0, 32], sizes = [2, 32], strides = [1, 1]} : vector<2x128xf32> to vector<2x32xf32>
    %479 = arith.negf %478 : vector<2x32xf32>
    %480 = math.exp %479 : vector<2x32xf32>
    %cst_142 = arith.constant 1.000000e+00 : f32
    %481 = vector.broadcast %cst_142 : f32 to vector<2x32xf32>
    %482 = arith.addf %481, %480 : vector<2x32xf32>
    %483 = arith.divf %481, %482 : vector<2x32xf32>
    %484 = vector.extract_strided_slice %471 {offsets = [0, 64], sizes = [2, 32], strides = [1, 1]} : vector<2x128xf32> to vector<2x32xf32>
    %485 = math.tanh %484 : vector<2x32xf32>
    %486 = vector.extract_strided_slice %471 {offsets = [0, 96], sizes = [2, 32], strides = [1, 1]} : vector<2x128xf32> to vector<2x32xf32>
    %487 = arith.negf %486 : vector<2x32xf32>
    %488 = math.exp %487 : vector<2x32xf32>
    %cst_143 = arith.constant 1.000000e+00 : f32
    %489 = vector.broadcast %cst_143 : f32 to vector<2x32xf32>
    %490 = arith.addf %489, %488 : vector<2x32xf32>
    %491 = arith.divf %489, %490 : vector<2x32xf32>
    %492 = arith.mulf %483, %462 : vector<2x32xf32>
    %493 = arith.mulf %477, %485 : vector<2x32xf32>
    %494 = arith.addf %492, %493 : vector<2x32xf32>
    %495 = math.tanh %494 : vector<2x32xf32>
    %496 = arith.mulf %491, %495 : vector<2x32xf32>
    %c12_144 = arith.constant 12 : index
    %c0_145 = arith.constant 0 : index
    %497 = vector.load %arg13[%c12_144, %c0_145] : memref<16x32xf32, #tpu.memory_space<vmem>>, vector<2x32xf32>
    tpu.vector_store %arg13[%c12_144, %c0_145], %496 {strides = array<i32>} : memref<16x32xf32, #tpu.memory_space<vmem>>, vector<2x32xf32>,
    %c14_146 = arith.constant 14 : index
    %c0_147 = arith.constant 0 : index
    %498 = vector.load %arg13[%c14_146, %c0_147] : memref<16x32xf32, #tpu.memory_space<vmem>>, vector<2x32xf32>
    %cst_148 = arith.constant dense<0.000000e+00> : vector<2x128xf32>
    %499 = tpu.matmul %498, %269, %cst_148 {dimension_numbers = #tpu.dot_dimension_numbers<[1], [0], [0], [1], [0, 0, 1, 1], [], []>} : vector<2x32xf32>, vector<32x128xf32>, vector<2x128xf32> -> vector<2x128xf32>
    %cst_149 = arith.constant dense<0.000000e+00> : vector<2x128xf32>
    %500 = tpu.matmul %496, %270, %cst_149 {dimension_numbers = #tpu.dot_dimension_numbers<[1], [0], [0], [1], [0, 0, 1, 1], [], []>} : vector<2x32xf32>, vector<32x128xf32>, vector<2x128xf32> -> vector<2x128xf32>
    %501 = arith.addf %499, %500 : vector<2x128xf32>
    %502 = vector.broadcast %271 : vector<1x128xf32> to vector<2x128xf32>
    %503 = arith.addf %501, %502 : vector<2x128xf32>
    %504 = vector.extract_strided_slice %503 {offsets = [0, 0], sizes = [2, 32], strides = [1, 1]} : vector<2x128xf32> to vector<2x32xf32>
    %505 = arith.negf %504 : vector<2x32xf32>
    %506 = math.exp %505 : vector<2x32xf32>
    %cst_150 = arith.constant 1.000000e+00 : f32
    %507 = vector.broadcast %cst_150 : f32 to vector<2x32xf32>
    %508 = arith.addf %507, %506 : vector<2x32xf32>
    %509 = arith.divf %507, %508 : vector<2x32xf32>
    %510 = vector.extract_strided_slice %503 {offsets = [0, 32], sizes = [2, 32], strides = [1, 1]} : vector<2x128xf32> to vector<2x32xf32>
    %511 = arith.negf %510 : vector<2x32xf32>
    %512 = math.exp %511 : vector<2x32xf32>
    %cst_151 = arith.constant 1.000000e+00 : f32
    %513 = vector.broadcast %cst_151 : f32 to vector<2x32xf32>
    %514 = arith.addf %513, %512 : vector<2x32xf32>
    %515 = arith.divf %513, %514 : vector<2x32xf32>
    %516 = vector.extract_strided_slice %503 {offsets = [0, 64], sizes = [2, 32], strides = [1, 1]} : vector<2x128xf32> to vector<2x32xf32>
    %517 = math.tanh %516 : vector<2x32xf32>
    %518 = vector.extract_strided_slice %503 {offsets = [0, 96], sizes = [2, 32], strides = [1, 1]} : vector<2x128xf32> to vector<2x32xf32>
    %519 = arith.negf %518 : vector<2x32xf32>
    %520 = math.exp %519 : vector<2x32xf32>
    %cst_152 = arith.constant 1.000000e+00 : f32
    %521 = vector.broadcast %cst_152 : f32 to vector<2x32xf32>
    %522 = arith.addf %521, %520 : vector<2x32xf32>
    %523 = arith.divf %521, %522 : vector<2x32xf32>
    %524 = arith.mulf %515, %494 : vector<2x32xf32>
    %525 = arith.mulf %509, %517 : vector<2x32xf32>
    %526 = arith.addf %524, %525 : vector<2x32xf32>
    %527 = math.tanh %526 : vector<2x32xf32>
    %528 = arith.mulf %523, %527 : vector<2x32xf32>
    %c14_153 = arith.constant 14 : index
    %c0_154 = arith.constant 0 : index
    %529 = vector.load %arg13[%c14_153, %c0_154] : memref<16x32xf32, #tpu.memory_space<vmem>>, vector<2x32xf32>
    tpu.vector_store %arg13[%c14_153, %c0_154], %528 {strides = array<i32>} : memref<16x32xf32, #tpu.memory_space<vmem>>, vector<2x32xf32>,
    %c0_155 = arith.constant 0 : index
    %c0_156 = arith.constant 0 : index
    %530 = vector.load %arg13[%c0_155, %c0_156] : memref<16x32xf32, #tpu.memory_space<vmem>>, vector<16x32xf32>
    %c0_157 = arith.constant 0 : index
    %c0_158 = arith.constant 0 : index
    %531 = vector.load %arg8[%c0_157, %c0_158] : memref<32x32xf32, #tpu.memory_space<vmem>>, vector<32x32xf32>
    %cst_159 = arith.constant dense<0.000000e+00> : vector<16x32xf32>
    %532 = tpu.matmul %530, %531, %cst_159 {dimension_numbers = #tpu.dot_dimension_numbers<[1], [0], [0], [1], [0, 0, 1, 1], [], []>} : vector<16x32xf32>, vector<32x32xf32>, vector<16x32xf32> -> vector<16x32xf32>
    %c0_160 = arith.constant 0 : index
    %c0_161 = arith.constant 0 : index
    %533 = vector.load %arg9[%c0_160, %c0_161] : memref<1x32xf32, #tpu.memory_space<vmem>>, vector<1x32xf32>
    %534 = vector.broadcast %533 : vector<1x32xf32> to vector<16x32xf32>
    %535 = arith.addf %532, %534 : vector<16x32xf32>
    %536 = arith.mulf %535, %535 : vector<16x32xf32>
    %537 = arith.mulf %535, %536 : vector<16x32xf32>
    %cst_162 = arith.constant 4.471500e-02 : f32
    %538 = vector.broadcast %cst_162 : f32 to vector<16x32xf32>
    %539 = arith.mulf %538, %537 : vector<16x32xf32>
    %540 = arith.addf %535, %539 : vector<16x32xf32>
    %cst_163 = arith.constant 0.797884583 : f32
    %541 = vector.broadcast %cst_163 : f32 to vector<16x32xf32>
    %542 = arith.mulf %541, %540 : vector<16x32xf32>
    %543 = math.tanh %542 : vector<16x32xf32>
    %cst_164 = arith.constant 1.000000e+00 : f32
    %544 = vector.broadcast %cst_164 : f32 to vector<16x32xf32>
    %545 = arith.addf %544, %543 : vector<16x32xf32>
    %cst_165 = arith.constant 5.000000e-01 : f32
    %546 = vector.broadcast %cst_165 : f32 to vector<16x32xf32>
    %547 = arith.mulf %546, %545 : vector<16x32xf32>
    %548 = arith.mulf %535, %547 : vector<16x32xf32>
    %c0_166 = arith.constant 0 : index
    %c0_167 = arith.constant 0 : index
    %549 = vector.load %arg10[%c0_166, %c0_167] : memref<1x32xf32, #tpu.memory_space<vmem>>, vector<1x32xf32>
    %550 = vector.broadcast %549 : vector<1x32xf32> to vector<16x32xf32>
    %551 = arith.mulf %548, %550 : vector<16x32xf32>
    %cst_168 = arith.constant dense<0.000000e+00> : vector<16xf32>
    %552 = vector.multi_reduction <add>, %551, %cst_168 [1] : vector<16x32xf32> to vector<16xf32>
    %553 = vector.shape_cast %552 : vector<16xf32> to vector<16x1xf32>
    %c0_169 = arith.constant 0 : index
    %c0_170 = arith.constant 0 : index
    %554 = vector.load %arg11[%c0_169, %c0_170] : memref<1x1xf32, #tpu.memory_space<vmem>>, vector<1x1xf32>
    %555 = vector.broadcast %554 : vector<1x1xf32> to vector<16x1xf32>
    %556 = arith.addf %553, %555 : vector<16x1xf32>
    %557 = vector.extract_strided_slice %556 {offsets = [0, 0], sizes = [2, 1], strides = [1, 1]} : vector<16x1xf32> to vector<2x1xf32>
    %c0_171 = arith.constant 0 : index
    %c0_172 = arith.constant 0 : index
    %c0_173 = arith.constant 0 : index
    %558 = vector.load %arg12[%c0_171, %c0_172, %c0_173] : memref<8x2x1xf32, #tpu.memory_space<vmem>>, vector<1x2x1xf32>
    %559 = vector.shape_cast %558 : vector<1x2x1xf32> to vector<2x1xf32>
    %560 = vector.shape_cast %557 : vector<2x1xf32> to vector<1x2x1xf32>
    tpu.vector_store %arg12[%c0_171, %c0_172, %c0_173], %560 {strides = array<i32>} : memref<8x2x1xf32, #tpu.memory_space<vmem>>, vector<1x2x1xf32>,
    %561 = vector.extract_strided_slice %556 {offsets = [2, 0], sizes = [2, 1], strides = [1, 1]} : vector<16x1xf32> to vector<2x1xf32>
    %c1_174 = arith.constant 1 : index
    %c0_175 = arith.constant 0 : index
    %c0_176 = arith.constant 0 : index
    %562 = vector.load %arg12[%c1_174, %c0_175, %c0_176] : memref<8x2x1xf32, #tpu.memory_space<vmem>>, vector<1x2x1xf32>
    %563 = vector.shape_cast %562 : vector<1x2x1xf32> to vector<2x1xf32>
    %564 = vector.shape_cast %561 : vector<2x1xf32> to vector<1x2x1xf32>
    tpu.vector_store %arg12[%c1_174, %c0_175, %c0_176], %564 {strides = array<i32>} : memref<8x2x1xf32, #tpu.memory_space<vmem>>, vector<1x2x1xf32>,
    %565 = vector.extract_strided_slice %556 {offsets = [4, 0], sizes = [2, 1], strides = [1, 1]} : vector<16x1xf32> to vector<2x1xf32>
    %c2_177 = arith.constant 2 : index
    %c0_178 = arith.constant 0 : index
    %c0_179 = arith.constant 0 : index
    %566 = vector.load %arg12[%c2_177, %c0_178, %c0_179] : memref<8x2x1xf32, #tpu.memory_space<vmem>>, vector<1x2x1xf32>
    %567 = vector.shape_cast %566 : vector<1x2x1xf32> to vector<2x1xf32>
    %568 = vector.shape_cast %565 : vector<2x1xf32> to vector<1x2x1xf32>
    tpu.vector_store %arg12[%c2_177, %c0_178, %c0_179], %568 {strides = array<i32>} : memref<8x2x1xf32, #tpu.memory_space<vmem>>, vector<1x2x1xf32>,
    %569 = vector.extract_strided_slice %556 {offsets = [6, 0], sizes = [2, 1], strides = [1, 1]} : vector<16x1xf32> to vector<2x1xf32>
    %c3_180 = arith.constant 3 : index
    %c0_181 = arith.constant 0 : index
    %c0_182 = arith.constant 0 : index
    %570 = vector.load %arg12[%c3_180, %c0_181, %c0_182] : memref<8x2x1xf32, #tpu.memory_space<vmem>>, vector<1x2x1xf32>
    %571 = vector.shape_cast %570 : vector<1x2x1xf32> to vector<2x1xf32>
    %572 = vector.shape_cast %569 : vector<2x1xf32> to vector<1x2x1xf32>
    tpu.vector_store %arg12[%c3_180, %c0_181, %c0_182], %572 {strides = array<i32>} : memref<8x2x1xf32, #tpu.memory_space<vmem>>, vector<1x2x1xf32>,
    %573 = vector.extract_strided_slice %556 {offsets = [8, 0], sizes = [2, 1], strides = [1, 1]} : vector<16x1xf32> to vector<2x1xf32>
    %c4_183 = arith.constant 4 : index
    %c0_184 = arith.constant 0 : index
    %c0_185 = arith.constant 0 : index
    %574 = vector.load %arg12[%c4_183, %c0_184, %c0_185] : memref<8x2x1xf32, #tpu.memory_space<vmem>>, vector<1x2x1xf32>
    %575 = vector.shape_cast %574 : vector<1x2x1xf32> to vector<2x1xf32>
    %576 = vector.shape_cast %573 : vector<2x1xf32> to vector<1x2x1xf32>
    tpu.vector_store %arg12[%c4_183, %c0_184, %c0_185], %576 {strides = array<i32>} : memref<8x2x1xf32, #tpu.memory_space<vmem>>, vector<1x2x1xf32>,
    %577 = vector.extract_strided_slice %556 {offsets = [10, 0], sizes = [2, 1], strides = [1, 1]} : vector<16x1xf32> to vector<2x1xf32>
    %c5_186 = arith.constant 5 : index
    %c0_187 = arith.constant 0 : index
    %c0_188 = arith.constant 0 : index
    %578 = vector.load %arg12[%c5_186, %c0_187, %c0_188] : memref<8x2x1xf32, #tpu.memory_space<vmem>>, vector<1x2x1xf32>
    %579 = vector.shape_cast %578 : vector<1x2x1xf32> to vector<2x1xf32>
    %580 = vector.shape_cast %577 : vector<2x1xf32> to vector<1x2x1xf32>
    tpu.vector_store %arg12[%c5_186, %c0_187, %c0_188], %580 {strides = array<i32>} : memref<8x2x1xf32, #tpu.memory_space<vmem>>, vector<1x2x1xf32>,
    %581 = vector.extract_strided_slice %556 {offsets = [12, 0], sizes = [2, 1], strides = [1, 1]} : vector<16x1xf32> to vector<2x1xf32>
    %c6_189 = arith.constant 6 : index
    %c0_190 = arith.constant 0 : index
    %c0_191 = arith.constant 0 : index
    %582 = vector.load %arg12[%c6_189, %c0_190, %c0_191] : memref<8x2x1xf32, #tpu.memory_space<vmem>>, vector<1x2x1xf32>
    %583 = vector.shape_cast %582 : vector<1x2x1xf32> to vector<2x1xf32>
    %584 = vector.shape_cast %581 : vector<2x1xf32> to vector<1x2x1xf32>
    tpu.vector_store %arg12[%c6_189, %c0_190, %c0_191], %584 {strides = array<i32>} : memref<8x2x1xf32, #tpu.memory_space<vmem>>, vector<1x2x1xf32>,
    %585 = vector.extract_strided_slice %556 {offsets = [14, 0], sizes = [2, 1], strides = [1, 1]} : vector<16x1xf32> to vector<2x1xf32>
    %c7_192 = arith.constant 7 : index
    %c0_193 = arith.constant 0 : index
    %c0_194 = arith.constant 0 : index
    %586 = vector.load %arg12[%c7_192, %c0_193, %c0_194] : memref<8x2x1xf32, #tpu.memory_space<vmem>>, vector<1x2x1xf32>
    %587 = vector.shape_cast %586 : vector<1x2x1xf32> to vector<2x1xf32>
    %588 = vector.shape_cast %585 : vector<2x1xf32> to vector<1x2x1xf32>
    tpu.vector_store %arg12[%c7_192, %c0_193, %c0_194], %588 {strides = array<i32>} : memref<8x2x1xf32, #tpu.memory_space<vmem>>, vector<1x2x1xf32>,
    return
  }
  func.func @transform_0(%arg0: i32) -> (i32, i32, i32) {
    %c0_i32 = arith.constant 0 : i32
    %c0_i32_0 = arith.constant 0 : i32
    %c0_i32_1 = arith.constant 0 : i32
    return %c0_i32, %arg0, %c0_i32_0 : i32, i32, i32
  }
  func.func @transform_1(%arg0: i32) -> (i32, i32) {
    %c0_i32 = arith.constant 0 : i32
    %c0_i32_0 = arith.constant 0 : i32
    %c0_i32_1 = arith.constant 0 : i32
    return %c0_i32, %c0_i32_0 : i32, i32
  }
  func.func @transform_2(%arg0: i32) -> (i32, i32) {
    %c0_i32 = arith.constant 0 : i32
    %c0_i32_0 = arith.constant 0 : i32
    %c0_i32_1 = arith.constant 0 : i32
    return %c0_i32, %c0_i32_0 : i32, i32
  }
  func.func @transform_3(%arg0: i32) -> (i32, i32) {
    %c0_i32 = arith.constant 0 : i32
    %c0_i32_0 = arith.constant 0 : i32
    %c0_i32_1 = arith.constant 0 : i32
    return %c0_i32, %c0_i32_0 : i32, i32
  }
  func.func @transform_4(%arg0: i32) -> (i32, i32) {
    %c0_i32 = arith.constant 0 : i32
    %c0_i32_0 = arith.constant 0 : i32
    %c0_i32_1 = arith.constant 0 : i32
    return %c0_i32, %c0_i32_0 : i32, i32
  }
  func.func @transform_5(%arg0: i32) -> (i32, i32) {
    %c0_i32 = arith.constant 0 : i32
    %c0_i32_0 = arith.constant 0 : i32
    %c0_i32_1 = arith.constant 0 : i32
    return %c0_i32, %c0_i32_0 : i32, i32
  }
  func.func @transform_6(%arg0: i32) -> (i32, i32) {
    %c0_i32 = arith.constant 0 : i32
    %c0_i32_0 = arith.constant 0 : i32
    %c0_i32_1 = arith.constant 0 : i32
    return %c0_i32, %c0_i32_0 : i32, i32
  }
  func.func @transform_7(%arg0: i32) -> (i32, i32) {
    %c0_i32 = arith.constant 0 : i32
    %c0_i32_0 = arith.constant 0 : i32
    %c0_i32_1 = arith.constant 0 : i32
    return %c0_i32, %c0_i32_0 : i32, i32
  }
  func.func @transform_8(%arg0: i32) -> (i32, i32) {
    %c0_i32 = arith.constant 0 : i32
    %c0_i32_0 = arith.constant 0 : i32
    %c0_i32_1 = arith.constant 0 : i32
    return %c0_i32, %c0_i32_0 : i32, i32
  }
  func.func @transform_9(%arg0: i32) -> (i32, i32) {
    %c0_i32 = arith.constant 0 : i32
    %c0_i32_0 = arith.constant 0 : i32
    %c0_i32_1 = arith.constant 0 : i32
    return %c0_i32, %c0_i32_0 : i32, i32
  }
  func.func @transform_10(%arg0: i32) -> (i32, i32) {
    %c0_i32 = arith.constant 0 : i32
    %c0_i32_0 = arith.constant 0 : i32
    %c0_i32_1 = arith.constant 0 : i32
    return %c0_i32, %c0_i32_0 : i32, i32
  }
  func.func @transform_11(%arg0: i32) -> (i32, i32, i32) {
    %c0_i32 = arith.constant 0 : i32
    %c0_i32_0 = arith.constant 0 : i32
    %c0_i32_1 = arith.constant 0 : i32
    return %c0_i32, %arg0, %c0_i32_0 : i32, i32, i32
  }
}

</mosaic_0001>

<bundles_post_ra>
// kernel: tpu_custom_call.1
= control target key start
LH: loop header
LB: loop body
LE: loop exit
PB: predicated region body
PF: predicated region fallthrough
CT: control target
= control target key end

     0   :  { %s4579_s0 = inlined_call_operand.hbm [shape: f32[8,2,16], index: 0, kind: input, shape index: {}]   ;;  %s4580_s1 = inlined_call_operand.hbm [shape: f32[16,128], index: 1, kind: input, shape index: {}]   ;;  %s4581_s2 = inlined_call_operand.hbm [shape: f32[32,128], index: 2, kind: input, shape index: {}]   ;;  %s4582_s3 = inlined_call_operand.vmem [shape: f32[1,128], index: 3, kind: input, shape index: {}]   ;;  %s4583_s4 = inlined_call_operand.hbm [shape: f32[32,128], index: 4, kind: input, shape index: {}]   ;;  %s4584_s5 = inlined_call_operand.hbm [shape: f32[32,128], index: 5, kind: input, shape index: {}]   ;;  %s4585_s6 = inlined_call_operand.vmem [shape: f32[1,128], index: 6, kind: input, shape index: {}]   ;;  %s4586_s7 = inlined_call_operand.hbm [shape: f32[32,32], index: 7, kind: input, shape index: {}]   ;;  %s4587_s8 = inlined_call_operand.vmem [shape: f32[1,32], index: 8, kind: input, shape index: {}]   ;;  %s4588_s9 = inlined_call_operand.vmem [shape: f32[1,32], index: 9, kind: input, shape index: {}]   ;;  %s4589_s10 = inlined_call_operand.<no memory space> [shape: f32[1,1], index: 10, kind: input, shape index: {}]   ;;  %s4590_s11 = inlined_call_operand.vmem [shape: f32[8,2,1], index: 11, kind: output, shape index: {}]  }
   0x1   :  { %v16_v0 = vstv %s4589_s10 }
   0x2   :  { %17 = vst [vmem:[#allocation3] sm:$0x1] %v16_v0 }
   0x3   :  { %18 = vsyncpa [#allocation5], 0 }
   0x4   :  { %19 = vsyncpa [#allocation7], 0 }
   0x5   :  { %20 = vsyncpa [#allocation10], 0 }
   0x6   :  { %21 = vsyncpa [#allocation13], 0  ;;  %s3953_s19 = smov [#allocation6]  }
   0x7   :  { %s39_s20 = sshll.u32 %s3953_s19, 4  ;;  %s40_s20 = int_to_ptr.vmem [resolvable:$true] %s39_s20 }
   0x8   :  { %s3833_s21 = scalar_lea.vmem %s40_s20, 256  ;;  %p3838_p1 = scmp.lt.s32.totalorder %s40_s20, %s40_s20 }
   0x9   :  { %p3834_p0 = scmp.ne.s32.totalorder %s40_s20, %s3833_s21  ;;  %p3839_p2 = scmp.lt.s32.totalorder %s3833_s21, %s3833_s21 }
   0xb   :  { %p3840_p3 = por %p3839_p2, %p3838_p1 }
   0xd   :  { %p3841_p4 = pnand %p3840_p3, %p3834_p0 }
   0xf   :  { %3844 = shalt.err (!%p3841_p4)
}
  0x10   :  { %s3954_s22 = smov 128   ;;  %s3955_s23 = smov 8  }
  0x11   :  { %45 = dma.hbm_to_vmem [thread:$0]  %s4580_s1, 256, %s40_s20, [#allocation7], %s3954_s22, %s3954_s22, %s3955_s23  }
  0x12   :  { %s3956_s25 = smov [#allocation9]   ;;  %s3957_s27 = smov [#allocation4]  }
  0x13   :  { %s65_s26 = sshll.u32 %s3956_s25, 4  ;;  %s27_s28 = sshll.u32 %s3957_s27, 4  ;;  %s66_s26 = int_to_ptr.vmem [resolvable:$true] %s65_s26  ;;  %s28_s28 = int_to_ptr.vmem [resolvable:$true] %s27_s28 }
  0x14   :  { %s3853_s29 = scalar_lea.vmem %s66_s26, 512  ;;  %p3858_p6 = scmp.lt.s32.totalorder %s66_s26, %s66_s26 }
  0x15   :  { %p3854_p5 = scmp.ne.s32.totalorder %s66_s26, %s3853_s29  ;;  %p3859_p7 = scmp.lt.s32.totalorder %s3853_s29, %s3853_s29 }
  0x17   :  { %p3860_p8 = por %p3859_p7, %p3858_p6 }
  0x19   :  { %p3861_p9 = pnand %p3860_p8, %p3854_p5 }
  0x1b   :  { %3864 = shalt.err (!%p3861_p9)
}
  0x1c   :  { %71 = dma.hbm_to_vmem [thread:$0]  %s4583_s4, 512, %s66_s26, [#allocation10], %s3954_s22, %s3954_s22, %s3955_s23  }
  0x1d   :  { %s3873_s1 = scalar_lea.vmem %s28_s28, 256  ;;  %p3878_p11 = scmp.lt.s32.totalorder %s28_s28, %s28_s28 }
  0x1e   :  { %p3874_p10 = scmp.ne.s32.totalorder %s28_s28, %s3873_s1  ;;  %p3879_p12 = scmp.lt.s32.totalorder %s3873_s1, %s3873_s1 }
  0x20   :  { %p3880_p13 = por %p3879_p12, %p3878_p11 }
  0x22   :  { %p3881_p0 = pnand %p3880_p13, %p3874_p10 }
  0x24   :  { %3884 = shalt.err (!%p3881_p0)
}
  0x25   :  { %s3958_s13 = smov 32   ;;  %s3959_s14 = smov 2  }
  0x26   :  { %33 = dma.hbm_to_vmem [thread:$0]  %s4579_s0, 256, %s28_s28, [#allocation5], %s3958_s13, %s3958_s13, %s3959_s14  }
  0x27   :  { %s3960_s17 = smov [#allocation8]   ;;  %s3961_s4 = smov [#allocation11]  }
  0x28   :  { %s51_s18 = sshll.u32 %s3960_s17, 4  ;;  %s77_s19 = sshll.u32 %s3961_s4, 4  ;;  %s52_s18 = int_to_ptr.vmem [resolvable:$true] %s51_s18  ;;  %s78_s19 = int_to_ptr.vmem [resolvable:$true] %s77_s19 }
  0x29   :  { %s3893_s20 = scalar_lea.vmem %s52_s18, 512  ;;  %p3898_p2 = scmp.lt.s32.totalorder %s52_s18, %s52_s18 }
  0x2a   :  { %p3894_p1 = scmp.ne.s32.totalorder %s52_s18, %s3893_s20  ;;  %p3899_p3 = scmp.lt.s32.totalorder %s3893_s20, %s3893_s20 }
  0x2c   :  { %p3900_p4 = por %p3899_p3, %p3898_p2 }
  0x2e   :  { %p3901_p5 = pnand %p3900_p4, %p3894_p1 }
  0x30   :  { %3904 = shalt.err (!%p3901_p5)
}
  0x31   :  { %57 = dma.hbm_to_vmem [thread:$0]  %s4581_s2, 512, %s52_s18, [#allocation7], %s3954_s22, %s3954_s22, %s3955_s23  }
  0x32   :  { %s3913_s0 = scalar_lea.vmem %s78_s19, 512  ;;  %p3918_p7 = scmp.lt.s32.totalorder %s78_s19, %s78_s19 }
  0x33   :  { %p3914_p6 = scmp.ne.s32.totalorder %s78_s19, %s3913_s0  ;;  %p3919_p8 = scmp.lt.s32.totalorder %s3913_s0, %s3913_s0 }
  0x35   :  { %p3920_p9 = por %p3919_p8, %p3918_p7 }
  0x37   :  { %p3921_p10 = pnand %p3920_p9, %p3914_p6 }
  0x39   :  { %3924 = shalt.err (!%p3921_p10)
}
  0x3a   :  { %83 = dma.hbm_to_vmem [thread:$0]  %s4584_s5, 512, %s78_s19, [#allocation10], %s3954_s22, %s3954_s22, %s3955_s23  }
  0x3b   :  { %s3962_s26 = smov [#allocation12]  }
  0x3c   :  { %s91_s27 = sshll.u32 %s3962_s26, 4  ;;  %s92_s27 = int_to_ptr.vmem [resolvable:$true] %s91_s27 }
  0x3d   :  { %s3933_s28 = scalar_lea.vmem %s92_s27, 512  ;;  %p3938_p12 = scmp.lt.s32.totalorder %s92_s27, %s92_s27 }
  0x3e   :  { %p3934_p11 = scmp.ne.s32.totalorder %s92_s27, %s3933_s28  ;;  %p3939_p13 = scmp.lt.s32.totalorder %s3933_s28, %s3933_s28 }
  0x40   :  { %p3940_p0 = por %p3939_p13, %p3938_p12 }
  0x42   :  { %p3941_p1 = pnand %p3940_p0, %p3934_p11 }
  0x44   :  { %3944 = shalt.err (!%p3941_p1)
}
  0x45   :  { %97 = dma.hbm_to_vmem [thread:$0]  %s4586_s7, 512, %s92_s27, [#allocation13], %s3954_s22, %s3954_s22, %s3955_s23  }
  0x46   :  { %3945 = dma.done.wait [#allocation5], 256  }
  0x47   :  { %3946 = vsyncadd [#allocation5], 4294967040 }
  0x48   :  { %3947 = dma.done.wait [#allocation7], 768  }
  0x49   :  { %3948 = vsyncadd [#allocation7], 4294966528 }
  0x4a   :  { %3949 = dma.done.wait [#allocation10], 1024  }
  0x4b   :  { %3950 = vsyncadd [#allocation10], 4294966272 }
  0x4c   :  { %3951 = dma.done.wait [#allocation13], 512  }
  0x4d   :  { %3952 = vsyncadd [#allocation13], 4294966784  ;;  %v3963_v1 = vmov 0.0   ;;  %vm3964_vm0 = vmmov 0   ;;  %v4070_v2 = vld [vmem:[#allocation8 + $0x18] sm:$0xff]  ;;  %v4072_v3 = vld [vmem:[#allocation8 + $0x10] sm:$0xff] }
  0x4e   :  { %3348 = vmatprep.subr.mxu0 %v3963_v1  ;;  %3359 = vmatprep.subr.mxu1 %v3963_v1  ;;  %v4074_v4 = vld [vmem:[#allocation6 + $0x8] sm:$0xff]  ;;  %v4078_v5 = vld [vmem:[#allocation6] sm:$0xff]  ;;  %v129_v6 = vld [vmem:[#allocation4] sm:$0x3]  ;;  %vm204_vm1 = vcmask 130048   ;;  %s3965_s22 = smov 64  }
  0x4f   :  { %3363 = vmatprep.mubr.msk.f32.mxu1 %vm3964_vm0, %v3963_v1  ;;  %3356 = vmatprep.mubr.msk.f32.mxu0 %vm3964_vm0, %v3963_v1  ;;  %v4082_v7 = vld [vmem:[#allocation8 + $0x8] sm:$0xff]  ;;  %v4088_v8 = vld [vmem:[#allocation8] sm:$0xff]  ;;  %vm313_vm2 = vcmask 254976   ;;  %vm130_vm3 = vcmask 261120   ;;  %vm3111_vm4 = vcmask 1024   ;;  %vm3114_vm5 = vcmask 3074  }
  0x50   :  { %3349 = vmatpush3.msra.mxu0 %v4070_v2  ;;  %3360 = vmatpush3.msra.mxu1 %v4074_v4  ;;  %v4119_v11 = vld [vmem:[%s4582_s3] ss:$0 sm:$0xff]  ;;  %v316_v30 = vld [vmem:[#allocation4 + $0x2] sm:$0x3]  ;;  %v493_v47 = vld [vmem:[#allocation4 + $0x4] sm:$0x3] }
  0x51   :  { %3350 = vmatprep.subr.mxu0 %v3963_v1  ;;  %3361 = vmatprep.subr.mxu1 %v3963_v1  ;;  %vm3117_vm6 = vcmask 5124   ;;  %vm3120_vm7 = vcmask 7174  }
  0x52   :  { %3351 = vmatpush3.msra.mxu0 %v4072_v3  ;;  %3362 = vmatpush3.msra.mxu1 %v4078_v5 }
  0x53   :  { %3352 = vmatprep.subr.mxu0 %v3963_v1  ;;  %3364 = vmatmul.mubr.msk.f32.vlgmr.msra.gmra.mxu1 %vm204_vm1, %v129_v6 }
  0x54   :  { %3353 = vmatpush3.msra.mxu0 %v4082_v7  ;;  %3366 = vmatprep.subr.mxu1 %v3963_v1 }
  0x55   :  { %3354 = vmatprep.subr.mxu0 %v3963_v1  ;;  %3367 = vmatpush3.msra.mxu1 %v4070_v2 }
  0x56   :  { %3355 = vmatpush3.msra.mxu0 %v4088_v8  ;;  %3368 = vmatprep.subr.mxu1 %v3963_v1 }
  0x57   :  { %3357 = vmatmul.mubr.f32.vlgmr.msra.gmra.mxu0 %v3963_v1  ;;  %3369 = vmatpush3.msra.mxu1 %v4072_v3 }
  0x58   :  { %3370 = vmatprep.subr.mxu1 %v3963_v1  ;;  %3374 = vmatprep.mubr.msk.f32.mxu1 %vm3964_vm0, %v3963_v1 }
  0x59   :  { %3371 = vmatpush3.msra.mxu1 %v4082_v7  ;;  %3384 = vmatprep.subr.mxu0 %v3963_v1 }
  0x5a   :  { %3372 = vmatprep.subr.mxu1 %v3963_v1  ;;  %3385 = vmatpush3.msra.mxu0 %v4070_v2 }
  0x5b   :  { %3373 = vmatpush3.msra.mxu1 %v4088_v8  ;;  %3386 = vmatprep.subr.mxu0 %v3963_v1 }
  0x5c   :  { %3377 = vmatprep.subr.mxu1 %v3963_v1  ;;  %3387 = vmatpush3.msra.mxu0 %v4072_v3 }
  0x5d   :  { %3388 = vmatprep.subr.mxu0 %v3963_v1  ;;  %3392 = vmatprep.mubr.msk.f32.mxu0 %vm3964_vm0, %v3963_v1 }
  0x5e   :  { %3389 = vmatpush3.msra.mxu0 %v4082_v7 }
  0x5f   :  { %3390 = vmatprep.subr.mxu0 %v3963_v1 }
  0x60   :  { %3391 = vmatpush3.msra.mxu0 %v4088_v8 }
  0x61   :  { %3413 = vmatprep.subr.mxu0 %v3963_v1 }
 0x113   :  { %v274_v9 = vpop.f32.mrf.mxu1 }
 0x115   :  { %v3365_v10 = vpop.f32.mrf.mxu1 }
 0x117   :  { %v200_v12 = vpop.f32.mrf.mxu0 }
 0x118   :  { %v275_v13 = vadd.f32 %v274_v9, %v200_v12  ;;  %v670_v12 = vld [vmem:[#allocation4 + $0x6] sm:$0x3] }
 0x119   :  { %v3358_v14 = vpop.f32.mrf.mxu0 }
 0x11a   :  { %v284_v15 = vadd.f32 %v4119_v11, %v275_v13 }
 0x11c   :  { %3692 = vtanh.f32 %v284_v15  ;;  %v3140_v17 = vmul.f32 -1.442695, %v284_v15 }
 0x11e   :  { %3694 = vpow2.f32 %v3140_v17 }
 0x129   :  { %v3693_v16 = vpop.eup %3692 }
 0x12a   :  { %294 = vrot.lane.b32.xlu0 %v3693_v16, %s3965_s22 }
 0x12b   :  { %v3695_v18 = vpop.eup %3694 }
 0x12c   :  { %v288_v19 = vadd.f32 1.0, %v3695_v18 }
 0x12e   :  { %3696 = vrcp.f32 %v288_v19 }
 0x13b   :  { %v3697_v20 = vpop.eup %3696 }
 0x13c   :  { %v292_v23 = vmul.f32 0.0, %v3697_v20 }
 0x19c   :  { %v295_v21 = vpop.permute.xlu0 %294 }
 0x19d   :  { %v297_v22 = vmul.f32 %v3697_v20, %v295_v21 }
 0x19f   :  { %299 = vrot.lane.b32.xlu0 %v297_v22, %s3958_s13 }
 0x211   :  { %v300_v24 = vpop.permute.xlu0 %299 }
 0x212   :  { %v302_v25 = vadd.f32 %v300_v24, %v292_v23 }
 0x214   :  { %3698 = vtanh.f32 %v302_v25 }
 0x221   :  { %v3699_v26 = vpop.eup %3698 }
 0x222   :  { %305 = vrot.lane.b32.xlu1 %v3699_v26, %s3965_s22 }
 0x294   :  { %v306_v27 = vpop.permute.xlu1 %305 }
 0x295   :  { %v308_v28 = vmul.f32 %v3697_v20, %v306_v27 }
 0x297   :  { %310 = vrot.lane.b32.xlu1 %v308_v28, %s3958_s13 }
 0x309   :  { %v311_v29 = vpop.permute.xlu1 %310 }
 0x30a   :  { %314 = vst.msk [vmem:[#allocation2] sm:$0x3] %vm313_vm2, %v311_v29  ;;  %3375 = vmatmul.mubr.msk.f32.vlgmr.msra.gmra.mxu1 %vm130_vm3, %v311_v29 }
 0x30b   :  { %3378 = vmatpush3.msra.mxu1 %v4074_v4  ;;  %3381 = vmatprep.mubr.msk.f32.mxu1 %vm3964_vm0, %v3963_v1 }
 0x30c   :  { %3379 = vmatprep.subr.mxu1 %v3963_v1 }
 0x30d   :  { %3380 = vmatpush3.msra.mxu1 %v4078_v5 }
 0x30e   :  { %3382 = vmatmul.mubr.msk.f32.vlgmr.msra.gmra.mxu1 %vm204_vm1, %v316_v30  ;;  %3395 = vmatprep.subr.mxu1 %v3963_v1 }
 0x30f   :  { %3396 = vmatpush3.msra.mxu1 %v4074_v4  ;;  %3399 = vmatprep.mubr.msk.f32.mxu1 %vm3964_vm0, %v3963_v1 }
 0x310   :  { %3397 = vmatprep.subr.mxu1 %v3963_v1 }
 0x311   :  { %3398 = vmatpush3.msra.mxu1 %v4078_v5 }
 0x312   :  { %3402 = vmatprep.subr.mxu1 %v3963_v1  ;;  %3400 = vmatmul.mubr.msk.f32.vlgmr.msra.gmra.mxu1 %vm204_vm1, %v493_v47 }
 0x313   :  { %3403 = vmatpush3.msra.mxu1 %v4070_v2  ;;  %3410 = vmatprep.mubr.msk.f32.mxu1 %vm3964_vm0, %v3963_v1 }
 0x314   :  { %3404 = vmatprep.subr.mxu1 %v3963_v1 }
 0x315   :  { %3405 = vmatpush3.msra.mxu1 %v4072_v3 }
 0x316   :  { %3406 = vmatprep.subr.mxu1 %v3963_v1 }
 0x317   :  { %3407 = vmatpush3.msra.mxu1 %v4082_v7 }
 0x318   :  { %3408 = vmatprep.subr.mxu1 %v3963_v1 }
 0x319   :  { %3409 = vmatpush3.msra.mxu1 %v4088_v8 }
 0x31a   :  { %3431 = vmatprep.subr.mxu1 %v3963_v1 }
 0x3ca   :  { %v385_v31 = vpop.f32.mrf.mxu1 }
 0x3cc   :  { %v3376_v32 = vpop.f32.mrf.mxu1 }
 0x3ce   :  { %v458_v33 = vpop.f32.mrf.mxu1 }
 0x3cf   :  { %v459_v34 = vadd.f32 %v458_v33, %v385_v31  ;;  %v847_v33 = vld [vmem:[#allocation4 + $0x8] sm:$0x3] }
 0x3d0   :  { %v3383_v35 = vpop.f32.mrf.mxu1 }
 0x3d1   :  { %v462_v36 = vadd.f32 %v4119_v11, %v459_v34 }
 0x3d2   :  { %v635_v51 = vpop.f32.mrf.mxu1 }
 0x3d3   :  { %3700 = vtanh.f32 %v462_v36  ;;  %v3143_v38 = vmul.f32 -1.442695, %v462_v36 }
 0x3d4   :  { %v3401_v52 = vpop.f32.mrf.mxu1 }
 0x3d5   :  { %3702 = vpow2.f32 %v3143_v38 }
 0x3e0   :  { %v3701_v37 = vpop.eup %3700 }
 0x3e1   :  { %472 = vrot.lane.b32.xlu0 %v3701_v37, %s3965_s22 }
 0x3e2   :  { %v3703_v39 = vpop.eup %3702 }
 0x3e3   :  { %v466_v40 = vadd.f32 1.0, %v3703_v39 }
 0x3e5   :  { %3704 = vrcp.f32 %v466_v40 }
 0x3f2   :  { %v3705_v41 = vpop.eup %3704 }
 0x3f3   :  { %v470_v44 = vmul.f32 %v3705_v41, %v302_v25 }
 0x453   :  { %v473_v42 = vpop.permute.xlu0 %472 }
 0x454   :  { %v475_v43 = vmul.f32 %v3705_v41, %v473_v42 }
 0x456   :  { %477 = vrot.lane.b32.xlu1 %v475_v43, %s3958_s13 }
 0x4c8   :  { %v478_v45 = vpop.permute.xlu1 %477 }
 0x4c9   :  { %v480_v46 = vadd.f32 %v478_v45, %v470_v44 }
 0x4cb   :  { %3706 = vtanh.f32 %v480_v46 }
 0x4d8   :  { %v3707_v48 = vpop.eup %3706 }
 0x4d9   :  { %483 = vrot.lane.b32.xlu0 %v3707_v48, %s3965_s22 }
 0x54b   :  { %v484_v49 = vpop.permute.xlu0 %483 }
 0x54c   :  { %v486_v50 = vmul.f32 %v3705_v41, %v484_v49 }
 0x54e   :  { %488 = vrot.lane.b32.xlu1 %v486_v50, %s3958_s13 }
 0x5c0   :  { %v489_v53 = vpop.permute.xlu1 %488 }
 0x5c1   :  { %491 = vst.msk [vmem:[#allocation2 + $0x2] sm:$0x3] %vm313_vm2, %v489_v53  ;;  %3393 = vmatmul.mubr.msk.f32.vlgmr.msra.gmra.mxu0 %vm130_vm3, %v489_v53 }
 0x5c2   :  { %3414 = vmatpush3.msra.mxu0 %v4074_v4  ;;  %3417 = vmatprep.mubr.msk.f32.mxu0 %vm3964_vm0, %v3963_v1 }
 0x5c3   :  { %3415 = vmatprep.subr.mxu0 %v3963_v1 }
 0x5c4   :  { %3416 = vmatpush3.msra.mxu0 %v4078_v5 }
 0x5c5   :  { %3420 = vmatprep.subr.mxu0 %v3963_v1  ;;  %3418 = vmatmul.mubr.msk.f32.vlgmr.msra.gmra.mxu0 %vm204_vm1, %v670_v12 }
 0x5c6   :  { %3421 = vmatpush3.msra.mxu0 %v4070_v2  ;;  %3428 = vmatprep.mubr.msk.f32.mxu0 %vm3964_vm0, %v3963_v1 }
 0x5c7   :  { %3422 = vmatprep.subr.mxu0 %v3963_v1 }
 0x5c8   :  { %3423 = vmatpush3.msra.mxu0 %v4072_v3 }
 0x5c9   :  { %3424 = vmatprep.subr.mxu0 %v3963_v1 }
 0x5ca   :  { %3425 = vmatpush3.msra.mxu0 %v4082_v7 }
 0x5cb   :  { %3426 = vmatprep.subr.mxu0 %v3963_v1 }
 0x5cc   :  { %3427 = vmatpush3.msra.mxu0 %v4088_v8 }
 0x5cd   :  { %3449 = vmatprep.subr.mxu0 %v3963_v1 }
 0x681   :  { %v562_v54 = vpop.f32.mrf.mxu0 }
 0x682   :  { %v636_v55 = vadd.f32 %v635_v51, %v562_v54  ;;  %v1024_v54 = vld [vmem:[#allocation4 + $0xa] sm:$0x3] }
 0x683   :  { %v3394_v56 = vpop.f32.mrf.mxu0 }
 0x684   :  { %v639_v57 = vadd.f32 %v4119_v11, %v636_v55 }
 0x685   :  { %v812_v16 = vpop.f32.mrf.mxu0 }
 0x686   :  { %3708 = vtanh.f32 %v639_v57  ;;  %v3146_v59 = vmul.f32 -1.442695, %v639_v57 }
 0x687   :  { %v3419_v17 = vpop.f32.mrf.mxu0 }
 0x688   :  { %3710 = vpow2.f32 %v3146_v59 }
 0x693   :  { %v3709_v58 = vpop.eup %3708 }
 0x694   :  { %649 = vrot.lane.b32.xlu0 %v3709_v58, %s3965_s22 }
 0x695   :  { %v3711_v60 = vpop.eup %3710 }
 0x696   :  { %v643_v61 = vadd.f32 1.0, %v3711_v60 }
 0x698   :  { %3712 = vrcp.f32 %v643_v61 }
 0x6a5   :  { %v3713_v62 = vpop.eup %3712 }
 0x6a6   :  { %v647_v6 = vmul.f32 %v3713_v62, %v480_v46 }
 0x706   :  { %v650_v63 = vpop.permute.xlu0 %649 }
 0x707   :  { %v652_v0 = vmul.f32 %v3713_v62, %v650_v63 }
 0x709   :  { %654 = vrot.lane.b32.xlu1 %v652_v0, %s3958_s13 }
 0x77b   :  { %v655_v9 = vpop.permute.xlu1 %654 }
 0x77c   :  { %v657_v10 = vadd.f32 %v655_v9, %v647_v6 }
 0x77e   :  { %3714 = vtanh.f32 %v657_v10 }
 0x78b   :  { %v3715_v13 = vpop.eup %3714 }
 0x78c   :  { %660 = vrot.lane.b32.xlu0 %v3715_v13, %s3965_s22 }
 0x7fe   :  { %v661_v14 = vpop.permute.xlu0 %660 }
 0x7ff   :  { %v663_v15 = vmul.f32 %v3713_v62, %v661_v14 }
 0x801   :  { %665 = vrot.lane.b32.xlu1 %v663_v15, %s3958_s13 }
 0x873   :  { %v666_v18 = vpop.permute.xlu1 %665 }
 0x874   :  { %668 = vst.msk [vmem:[#allocation2 + $0x4] sm:$0x3] %vm313_vm2, %v666_v18  ;;  %3411 = vmatmul.mubr.msk.f32.vlgmr.msra.gmra.mxu1 %vm130_vm3, %v666_v18 }
 0x875   :  { %3432 = vmatpush3.msra.mxu1 %v4074_v4  ;;  %3435 = vmatprep.mubr.msk.f32.mxu1 %vm3964_vm0, %v3963_v1 }
 0x876   :  { %3433 = vmatprep.subr.mxu1 %v3963_v1 }
 0x877   :  { %3434 = vmatpush3.msra.mxu1 %v4078_v5 }
 0x878   :  { %3438 = vmatprep.subr.mxu1 %v3963_v1  ;;  %3436 = vmatmul.mubr.msk.f32.vlgmr.msra.gmra.mxu1 %vm204_vm1, %v847_v33 }
 0x879   :  { %3439 = vmatpush3.msra.mxu1 %v4070_v2  ;;  %3446 = vmatprep.mubr.msk.f32.mxu1 %vm3964_vm0, %v3963_v1 }
 0x87a   :  { %3440 = vmatprep.subr.mxu1 %v3963_v1 }
 0x87b   :  { %3441 = vmatpush3.msra.mxu1 %v4072_v3 }
 0x87c   :  { %3442 = vmatprep.subr.mxu1 %v3963_v1 }
 0x87d   :  { %3443 = vmatpush3.msra.mxu1 %v4082_v7 }
 0x87e   :  { %3444 = vmatprep.subr.mxu1 %v3963_v1 }
 0x87f   :  { %3445 = vmatpush3.msra.mxu1 %v4088_v8 }
 0x880   :  { %3467 = vmatprep.subr.mxu1 %v3963_v1 }
 0x934   :  { %v739_v19 = vpop.f32.mrf.mxu1 }
 0x935   :  { %v813_v20 = vadd.f32 %v812_v16, %v739_v19  ;;  %v1201_v19 = vld [vmem:[#allocation4 + $0xc] sm:$0x3] }
 0x936   :  { %v3412_v21 = vpop.f32.mrf.mxu1 }
 0x937   :  { %v816_v22 = vadd.f32 %v4119_v11, %v813_v20 }
 0x938   :  { %v989_v37 = vpop.f32.mrf.mxu1 }
 0x939   :  { %3716 = vtanh.f32 %v816_v22  ;;  %v3149_v24 = vmul.f32 -1.442695, %v816_v22 }
 0x93a   :  { %v3437_v38 = vpop.f32.mrf.mxu1 }
 0x93b   :  { %3718 = vpow2.f32 %v3149_v24  ;;  %v4283_v38 = vld [vmem:[#allocation11] sm:$0xff] }
 0x946   :  { %v3717_v23 = vpop.eup %3716 }
 0x947   :  { %826 = vrot.lane.b32.xlu0 %v3717_v23, %s3965_s22 }
 0x948   :  { %v3719_v25 = vpop.eup %3718 }
 0x949   :  { %v820_v26 = vadd.f32 1.0, %v3719_v25 }
 0x94b   :  { %3720 = vrcp.f32 %v820_v26 }
 0x958   :  { %v3721_v27 = vpop.eup %3720 }
 0x959   :  { %v824_v30 = vmul.f32 %v3721_v27, %v657_v10 }
 0x9b9   :  { %v827_v28 = vpop.permute.xlu0 %826 }
 0x9ba   :  { %v829_v29 = vmul.f32 %v3721_v27, %v827_v28 }
 0x9bc   :  { %831 = vrot.lane.b32.xlu1 %v829_v29, %s3958_s13 }
 0xa2e   :  { %v832_v31 = vpop.permute.xlu1 %831 }
 0xa2f   :  { %v834_v32 = vadd.f32 %v832_v31, %v824_v30 }
 0xa31   :  { %3722 = vtanh.f32 %v834_v32 }
 0xa3e   :  { %v3723_v34 = vpop.eup %3722 }
 0xa3f   :  { %837 = vrot.lane.b32.xlu0 %v3723_v34, %s3965_s22  ;;  %v4267_v34 = vld [vmem:[#allocation11 + $0x18] sm:$0xff] }
 0xab1   :  { %v838_v35 = vpop.permute.xlu0 %837 }
 0xab2   :  { %v840_v36 = vmul.f32 %v3721_v27, %v838_v35 }
 0xab4   :  { %842 = vrot.lane.b32.xlu1 %v840_v36, %s3958_s13  ;;  %v4275_v36 = vld [vmem:[#allocation11 + $0x10] sm:$0xff] }
 0xb26   :  { %v843_v39 = vpop.permute.xlu1 %842 }
 0xb27   :  { %845 = vst.msk [vmem:[#allocation2 + $0x6] sm:$0x3] %vm313_vm2, %v843_v39  ;;  %3429 = vmatmul.mubr.msk.f32.vlgmr.msra.gmra.mxu0 %vm130_vm3, %v843_v39 }
 0xb28   :  { %3450 = vmatpush3.msra.mxu0 %v4074_v4  ;;  %3453 = vmatprep.mubr.msk.f32.mxu0 %vm3964_vm0, %v3963_v1 }
 0xb29   :  { %3451 = vmatprep.subr.mxu0 %v3963_v1 }
 0xb2a   :  { %3452 = vmatpush3.msra.mxu0 %v4078_v5 }
 0xb2b   :  { %3456 = vmatprep.subr.mxu0 %v3963_v1  ;;  %3454 = vmatmul.mubr.msk.f32.vlgmr.msra.gmra.mxu0 %vm204_vm1, %v1024_v54 }
 0xb2c   :  { %3457 = vmatpush3.msra.mxu0 %v4070_v2  ;;  %3464 = vmatprep.mubr.msk.f32.mxu0 %vm3964_vm0, %v3963_v1 }
 0xb2d   :  { %3458 = vmatprep.subr.mxu0 %v3963_v1 }
 0xb2e   :  { %3459 = vmatpush3.msra.mxu0 %v4072_v3 }
 0xb2f   :  { %3460 = vmatprep.subr.mxu0 %v3963_v1 }
 0xb30   :  { %3461 = vmatpush3.msra.mxu0 %v4082_v7 }
 0xb31   :  { %3462 = vmatprep.subr.mxu0 %v3963_v1 }
 0xb32   :  { %3463 = vmatpush3.msra.mxu0 %v4088_v8 }
 0xb33   :  { %3485 = vmatprep.subr.mxu0 %v3963_v1 }
 0xbe7   :  { %v916_v40 = vpop.f32.mrf.mxu0 }
 0xbe8   :  { %v990_v41 = vadd.f32 %v989_v37, %v916_v40  ;;  %v4279_v37 = vld [vmem:[#allocation11 + $0x8] sm:$0xff] }
 0xbe9   :  { %v3430_v42 = vpop.f32.mrf.mxu0 }
 0xbea   :  { %v993_v43 = vadd.f32 %v4119_v11, %v990_v41 }
 0xbeb   :  { %v1166_v58 = vpop.f32.mrf.mxu0 }
 0xbec   :  { %3724 = vtanh.f32 %v993_v43  ;;  %v3152_v45 = vmul.f32 -1.442695, %v993_v43  ;;  %v4301_v43 = vld [vmem:[#allocation9 + $0x18] sm:$0xff] }
 0xbed   :  { %v3455_v59 = vpop.f32.mrf.mxu0 }
 0xbee   :  { %3726 = vpow2.f32 %v3152_v45  ;;  %v4305_v45 = vld [vmem:[#allocation9 + $0x10] sm:$0xff]  ;;  %v4402_v59 = vld [vmem:[%s4585_s6] ss:$0 sm:$0xff] }
 0xbf9   :  { %v3725_v44 = vpop.eup %3724 }
 0xbfa   :  { %1003 = vrot.lane.b32.xlu0 %v3725_v44, %s3965_s22 }
 0xbfb   :  { %v3727_v46 = vpop.eup %3726 }
 0xbfc   :  { %v997_v47 = vadd.f32 1.0, %v3727_v46  ;;  %v4311_v46 = vld [vmem:[#allocation9 + $0x8] sm:$0xff] }
 0xbfe   :  { %3728 = vrcp.f32 %v997_v47  ;;  %v4315_v47 = vld [vmem:[#allocation9] sm:$0xff] }
 0xc0b   :  { %v3729_v48 = vpop.eup %3728 }
 0xc0c   :  { %v1001_v51 = vmul.f32 %v3729_v48, %v834_v32 }
 0xc6c   :  { %v1004_v49 = vpop.permute.xlu0 %1003 }
 0xc6d   :  { %v1006_v50 = vmul.f32 %v3729_v48, %v1004_v49  ;;  %v1743_v49 = vld [vmem:[#allocation2 + $0x2] sm:$0x3] }
 0xc6f   :  { %1008 = vrot.lane.b32.xlu1 %v1006_v50, %s3958_s13  ;;  %v1919_v50 = vld [vmem:[#allocation2 + $0x4] sm:$0x3] }
 0xce1   :  { %v1009_v52 = vpop.permute.xlu1 %1008 }
 0xce2   :  { %v1011_v53 = vadd.f32 %v1009_v52, %v1001_v51  ;;  %v2095_v51 = vld [vmem:[#allocation2 + $0x6] sm:$0x3] }
 0xce4   :  { %3730 = vtanh.f32 %v1011_v53 }
 0xcf1   :  { %v3731_v55 = vpop.eup %3730 }
 0xcf2   :  { %1014 = vrot.lane.b32.xlu0 %v3731_v55, %s3965_s22 }
 0xd64   :  { %v1015_v56 = vpop.permute.xlu0 %1014 }
 0xd65   :  { %v1017_v57 = vmul.f32 %v3729_v48, %v1015_v56  ;;  %v1563_v48 = vld [vmem:[#allocation2] sm:$0x3] }
 0xd67   :  { %1019 = vrot.lane.b32.xlu1 %v1017_v57, %s3958_s13 }
 0xdd9   :  { %v1020_v60 = vpop.permute.xlu1 %1019 }
 0xdda   :  { %1022 = vst.msk [vmem:[#allocation2 + $0x8] sm:$0x3] %vm313_vm2, %v1020_v60  ;;  %3447 = vmatmul.mubr.msk.f32.vlgmr.msra.gmra.mxu1 %vm130_vm3, %v1020_v60 }
 0xddb   :  { %3468 = vmatpush3.msra.mxu1 %v4074_v4  ;;  %3471 = vmatprep.mubr.msk.f32.mxu1 %vm3964_vm0, %v3963_v1 }
 0xddc   :  { %3469 = vmatprep.subr.mxu1 %v3963_v1 }
 0xddd   :  { %3470 = vmatpush3.msra.mxu1 %v4078_v5 }
 0xdde   :  { %3474 = vmatprep.subr.mxu1 %v3963_v1  ;;  %3472 = vmatmul.mubr.msk.f32.vlgmr.msra.gmra.mxu1 %vm204_vm1, %v1201_v19 }
 0xddf   :  { %3475 = vmatpush3.msra.mxu1 %v4070_v2  ;;  %3482 = vmatprep.mubr.msk.f32.mxu1 %vm3964_vm0, %v3963_v1 }
 0xde0   :  { %3476 = vmatprep.subr.mxu1 %v3963_v1 }
 0xde1   :  { %3477 = vmatpush3.msra.mxu1 %v4072_v3  ;;  %v2271_v52 = vld [vmem:[#allocation2 + $0x8] sm:$0x3] }
 0xde2   :  { %3478 = vmatprep.subr.mxu1 %v3963_v1 }
 0xde3   :  { %3479 = vmatpush3.msra.mxu1 %v4082_v7 }
 0xde4   :  { %3480 = vmatprep.subr.mxu1 %v3963_v1 }
 0xde5   :  { %3481 = vmatpush3.msra.mxu1 %v4088_v8 }
 0xde6   :  { %3503 = vmatprep.subr.mxu1 %v3963_v1 }
 0xe9a   :  { %v1093_v61 = vpop.f32.mrf.mxu1 }
 0xe9b   :  { %v1167_v62 = vadd.f32 %v1166_v58, %v1093_v61 }
 0xe9c   :  { %v3448_v63 = vpop.f32.mrf.mxu1 }
 0xe9d   :  { %v1170_v0 = vadd.f32 %v4119_v11, %v1167_v62 }
 0xe9e   :  { %v1343_v22 = vpop.f32.mrf.mxu1 }
 0xe9f   :  { %3732 = vtanh.f32 %v1170_v0  ;;  %v3155_v9 = vmul.f32 -1.442695, %v1170_v0 }
 0xea0   :  { %v3473_v23 = vpop.f32.mrf.mxu1 }
 0xea1   :  { %3734 = vpow2.f32 %v3155_v9 }
 0xeac   :  { %v3733_v6 = vpop.eup %3732 }
 0xead   :  { %1180 = vrot.lane.b32.xlu0 %v3733_v6, %s3965_s22 }
 0xeae   :  { %v3735_v10 = vpop.eup %3734 }
 0xeaf   :  { %v1174_v12 = vadd.f32 1.0, %v3735_v10 }
 0xeb1   :  { %3736 = vrcp.f32 %v1174_v12 }
 0xebe   :  { %v3737_v13 = vpop.eup %3736 }
 0xebf   :  { %v1178_v16 = vmul.f32 %v3737_v13, %v1011_v53 }
 0xf1f   :  { %v1181_v14 = vpop.permute.xlu0 %1180 }
 0xf20   :  { %v1183_v15 = vmul.f32 %v3737_v13, %v1181_v14 }
 0xf22   :  { %1185 = vrot.lane.b32.xlu1 %v1183_v15, %s3958_s13 }
 0xf94   :  { %v1186_v17 = vpop.permute.xlu1 %1185 }
 0xf95   :  { %v1188_v18 = vadd.f32 %v1186_v17, %v1178_v16 }
 0xf97   :  { %3738 = vtanh.f32 %v1188_v18 }
 0xfa4   :  { %v3739_v20 = vpop.eup %3738 }
 0xfa5   :  { %1191 = vrot.lane.b32.xlu0 %v3739_v20, %s3965_s22 }
0x1017   :  { %v1192_v2 = vpop.permute.xlu0 %1191 }
0x1018   :  { %v1194_v21 = vmul.f32 %v3737_v13, %v1192_v2 }
0x101a   :  { %1196 = vrot.lane.b32.xlu1 %v1194_v21, %s3958_s13 }
0x108c   :  { %v1197_v3 = vpop.permute.xlu1 %1196 }
0x108d   :  { %1199 = vst.msk [vmem:[#allocation2 + $0xa] sm:$0x3] %vm313_vm2, %v1197_v3  ;;  %3465 = vmatmul.mubr.msk.f32.vlgmr.msra.gmra.mxu0 %vm130_vm3, %v1197_v3 }
0x108e   :  { %3486 = vmatpush3.msra.mxu0 %v4074_v4  ;;  %3489 = vmatprep.mubr.msk.f32.mxu0 %vm3964_vm0, %v3963_v1 }
0x108f   :  { %3487 = vmatprep.subr.mxu0 %v3963_v1 }
0x1090   :  { %3488 = vmatpush3.msra.mxu0 %v4078_v5 }
0x1091   :  { %3492 = vmatprep.subr.mxu0 %v3963_v1 }
0x1094   :  { %v2447_v53 = vld [vmem:[#allocation2 + $0xa] sm:$0x3] }
0x114d   :  { %v1270_v7 = vpop.f32.mrf.mxu0 }
0x114e   :  { %v1344_v8 = vadd.f32 %v1343_v22, %v1270_v7 }
0x114f   :  { %v3466_v24 = vpop.f32.mrf.mxu0 }
0x1150   :  { %v1347_v25 = vadd.f32 %v4119_v11, %v1344_v8  ;;  %v1378_v11 = vld [vmem:[#allocation4 + $0xe] sm:$0x3] }
0x1151   :  { %3490 = vmatmul.mubr.msk.f32.vlgmr.msra.gmra.mxu0 %vm204_vm1, %v1378_v11 }
0x1152   :  { %3740 = vtanh.f32 %v1347_v25  ;;  %v3158_v27 = vmul.f32 -1.442695, %v1347_v25  ;;  %3493 = vmatpush3.msra.mxu0 %v4267_v34  ;;  %3500 = vmatprep.mubr.msk.f32.mxu0 %vm3964_vm0, %v3963_v1 }
0x1153   :  { %3494 = vmatprep.subr.mxu0 %v3963_v1 }
0x1154   :  { %3742 = vpow2.f32 %v3158_v27  ;;  %3495 = vmatpush3.msra.mxu0 %v4275_v36 }
0x1155   :  { %3496 = vmatprep.subr.mxu0 %v3963_v1 }
0x1156   :  { %3497 = vmatpush3.msra.mxu0 %v4279_v37 }
0x1157   :  { %3498 = vmatprep.subr.mxu0 %v3963_v1 }
0x1158   :  { %3499 = vmatpush3.msra.mxu0 %v4283_v38 }
0x1159   :  { %3501 = vmatmul.mubr.f32.vlgmr.msra.gmra.mxu0 %v3963_v1  ;;  %3514 = vmatprep.subr.mxu0 %v3963_v1 }
0x115a   :  { %3515 = vmatpush3.msra.mxu0 %v4267_v34  ;;  %3522 = vmatprep.mubr.msk.f32.mxu0 %vm3964_vm0, %v3963_v1 }
0x115b   :  { %3516 = vmatprep.subr.mxu0 %v3963_v1 }
0x115c   :  { %3517 = vmatpush3.msra.mxu0 %v4275_v36 }
0x115d   :  { %3518 = vmatprep.subr.mxu0 %v3963_v1 }
0x115e   :  { %3519 = vmatpush3.msra.mxu0 %v4279_v37 }
0x115f   :  { %v3741_v26 = vpop.eup %3740  ;;  %3520 = vmatprep.subr.mxu0 %v3963_v1 }
0x1160   :  { %1357 = vrot.lane.b32.xlu0 %v3741_v26, %s3965_s22  ;;  %3521 = vmatpush3.msra.mxu0 %v4283_v38 }
0x1161   :  { %v3743_v4 = vpop.eup %3742  ;;  %3536 = vmatprep.subr.mxu0 %v3963_v1 }
0x1162   :  { %v1351_v28 = vadd.f32 1.0, %v3743_v4 }
0x1164   :  { %3744 = vrcp.f32 %v1351_v28 }
0x1171   :  { %v3745_v29 = vpop.eup %3744 }
0x1172   :  { %v1355_v5 = vmul.f32 %v3745_v29, %v1188_v18 }
0x11d2   :  { %v1358_v30 = vpop.permute.xlu0 %1357 }
0x11d3   :  { %v1360_v31 = vmul.f32 %v3745_v29, %v1358_v30 }
0x11d5   :  { %1362 = vrot.lane.b32.xlu1 %v1360_v31, %s3958_s13 }
0x1211   :  { %v4299_v41 = vpop.f32.mrf.mxu0 }
0x1213   :  { %v3491_v42 = vpop.f32.mrf.mxu0 }
0x1219   :  { %v1630_v55 = vpop.f32.mrf.mxu0 }
0x121b   :  { %v3502_v56 = vpop.f32.mrf.mxu0 }
0x1247   :  { %v1363_v32 = vpop.permute.xlu1 %1362 }
0x1248   :  { %v4264_v33 = vadd.f32 %v1363_v32, %v1355_v5 }
0x124a   :  { %3746 = vtanh.f32 %v4264_v33 }
0x1257   :  { %v3747_v35 = vpop.eup %3746 }
0x1258   :  { %1368 = vrot.lane.b32.xlu0 %v3747_v35, %s3965_s22 }
0x12ca   :  { %v1369_v39 = vpop.permute.xlu0 %1368 }
0x12cb   :  { %v1371_v40 = vmul.f32 %v3745_v29, %v1369_v39 }
0x12cd   :  { %1373 = vrot.lane.b32.xlu1 %v1371_v40, %s3958_s13 }
0x133f   :  { %v1374_v44 = vpop.permute.xlu1 %1373 }
0x1340   :  { %1376 = vst.msk [vmem:[#allocation2 + $0xc] sm:$0x3] %vm313_vm2, %v1374_v44  ;;  %3483 = vmatmul.mubr.msk.f32.vlgmr.msra.gmra.mxu1 %vm130_vm3, %v1374_v44 }
0x1341   :  { %3504 = vmatpush3.msra.mxu1 %v4301_v43  ;;  %3511 = vmatprep.mubr.msk.f32.mxu1 %vm3964_vm0, %v3963_v1 }
0x1342   :  { %3505 = vmatprep.subr.mxu1 %v3963_v1 }
0x1343   :  { %3506 = vmatpush3.msra.mxu1 %v4305_v45 }
0x1344   :  { %3507 = vmatprep.subr.mxu1 %v3963_v1 }
0x1345   :  { %3508 = vmatpush3.msra.mxu1 %v4311_v46 }
0x1346   :  { %3509 = vmatprep.subr.mxu1 %v3963_v1 }
0x1347   :  { %3510 = vmatpush3.msra.mxu1 %v4315_v47  ;;  %v2623_v54 = vld [vmem:[#allocation2 + $0xc] sm:$0x3] }
0x1348   :  { %3512 = vmatmul.mubr.msk.f32.vlgmr.msra.gmra.mxu1 %vm130_vm3, %v1563_v48  ;;  %3525 = vmatprep.subr.mxu1 %v3963_v1 }
0x1349   :  { %3526 = vmatpush3.msra.mxu1 %v4301_v43  ;;  %3533 = vmatprep.mubr.msk.f32.mxu1 %vm3964_vm0, %v3963_v1 }
0x134a   :  { %3527 = vmatprep.subr.mxu1 %v3963_v1 }
0x134b   :  { %3528 = vmatpush3.msra.mxu1 %v4305_v45 }
0x134c   :  { %3529 = vmatprep.subr.mxu1 %v3963_v1 }
0x134d   :  { %3530 = vmatpush3.msra.mxu1 %v4311_v46 }
0x134e   :  { %3531 = vmatprep.subr.mxu1 %v3963_v1 }
0x134f   :  { %3532 = vmatpush3.msra.mxu1 %v4315_v47 }
0x1350   :  { %3534 = vmatmul.mubr.msk.f32.vlgmr.msra.gmra.mxu1 %vm130_vm3, %v1743_v49  ;;  %3547 = vmatprep.subr.mxu1 %v3963_v1 }
0x1351   :  { %3548 = vmatpush3.msra.mxu1 %v4301_v43  ;;  %3555 = vmatprep.mubr.msk.f32.mxu1 %vm3964_vm0, %v3963_v1 }
0x1352   :  { %3549 = vmatprep.subr.mxu1 %v3963_v1 }
0x1353   :  { %3550 = vmatpush3.msra.mxu1 %v4305_v45 }
0x1354   :  { %3551 = vmatprep.subr.mxu1 %v3963_v1 }
0x1355   :  { %3552 = vmatpush3.msra.mxu1 %v4311_v46 }
0x1356   :  { %3553 = vmatprep.subr.mxu1 %v3963_v1 }
0x1357   :  { %3554 = vmatpush3.msra.mxu1 %v4315_v47 }
0x1358   :  { %3556 = vmatmul.mubr.msk.f32.vlgmr.msra.gmra.mxu1 %vm130_vm3, %v1919_v50  ;;  %3569 = vmatprep.subr.mxu1 %v3963_v1 }
0x1359   :  { %3570 = vmatpush3.msra.mxu1 %v4301_v43  ;;  %3577 = vmatprep.mubr.msk.f32.mxu1 %vm3964_vm0, %v3963_v1 }
0x135a   :  { %3571 = vmatprep.subr.mxu1 %v3963_v1 }
0x135b   :  { %3572 = vmatpush3.msra.mxu1 %v4305_v45 }
0x135c   :  { %3573 = vmatprep.subr.mxu1 %v3963_v1 }
0x135d   :  { %3574 = vmatpush3.msra.mxu1 %v4311_v46 }
0x135e   :  { %3575 = vmatprep.subr.mxu1 %v3963_v1 }
0x135f   :  { %3576 = vmatpush3.msra.mxu1 %v4315_v47 }
0x1360   :  { %3578 = vmatmul.mubr.msk.f32.vlgmr.msra.gmra.mxu1 %vm130_vm3, %v2095_v51  ;;  %3591 = vmatprep.subr.mxu1 %v3963_v1 }
0x1361   :  { %3592 = vmatpush3.msra.mxu1 %v4301_v43  ;;  %3599 = vmatprep.mubr.msk.f32.mxu1 %vm3964_vm0, %v3963_v1 }
0x1362   :  { %3593 = vmatprep.subr.mxu1 %v3963_v1 }
0x1363   :  { %3594 = vmatpush3.msra.mxu1 %v4305_v45 }
0x1364   :  { %3595 = vmatprep.subr.mxu1 %v3963_v1 }
0x1365   :  { %3596 = vmatpush3.msra.mxu1 %v4311_v46 }
0x1366   :  { %3597 = vmatprep.subr.mxu1 %v3963_v1 }
0x1367   :  { %3598 = vmatpush3.msra.mxu1 %v4315_v47 }
0x1368   :  { %3600 = vmatmul.mubr.msk.f32.vlgmr.msra.gmra.mxu1 %vm130_vm3, %v2271_v52  ;;  %3613 = vmatprep.subr.mxu1 %v3963_v1 }
0x1369   :  { %3614 = vmatpush3.msra.mxu1 %v4301_v43  ;;  %3621 = vmatprep.mubr.msk.f32.mxu1 %vm3964_vm0, %v3963_v1 }
0x136a   :  { %3615 = vmatprep.subr.mxu1 %v3963_v1 }
0x136b   :  { %3616 = vmatpush3.msra.mxu1 %v4305_v45 }
0x136c   :  { %3617 = vmatprep.subr.mxu1 %v3963_v1 }
0x136d   :  { %3618 = vmatpush3.msra.mxu1 %v4311_v46 }
0x136e   :  { %3619 = vmatprep.subr.mxu1 %v3963_v1 }
0x136f   :  { %3620 = vmatpush3.msra.mxu1 %v4315_v47 }
0x1370   :  { %3622 = vmatmul.mubr.msk.f32.vlgmr.msra.gmra.mxu1 %vm130_vm3, %v2447_v53  ;;  %3635 = vmatprep.subr.mxu1 %v3963_v1 }
0x1371   :  { %3636 = vmatpush3.msra.mxu1 %v4301_v43  ;;  %3643 = vmatprep.mubr.msk.f32.mxu1 %vm3964_vm0, %v3963_v1 }
0x1372   :  { %3637 = vmatprep.subr.mxu1 %v3963_v1 }
0x1373   :  { %3638 = vmatpush3.msra.mxu1 %v4305_v45 }
0x1374   :  { %3639 = vmatprep.subr.mxu1 %v3963_v1 }
0x1375   :  { %3640 = vmatpush3.msra.mxu1 %v4311_v46 }
0x1376   :  { %3641 = vmatprep.subr.mxu1 %v3963_v1 }
0x1377   :  { %3642 = vmatpush3.msra.mxu1 %v4315_v47 }
0x1378   :  { %3644 = vmatmul.mubr.msk.f32.vlgmr.msra.gmra.mxu1 %vm130_vm3, %v2623_v54  ;;  %3657 = vmatprep.subr.mxu1 %v3963_v1 }
0x1379   :  { %3658 = vmatpush3.msra.mxu1 %v4301_v43  ;;  %3665 = vmatprep.mubr.msk.f32.mxu1 %vm3964_vm0, %v3963_v1 }
0x137a   :  { %3659 = vmatprep.subr.mxu1 %v3963_v1 }
0x137b   :  { %3660 = vmatpush3.msra.mxu1 %v4305_v45 }
0x137c   :  { %3661 = vmatprep.subr.mxu1 %v3963_v1 }
0x137d   :  { %3662 = vmatpush3.msra.mxu1 %v4311_v46 }
0x137e   :  { %3663 = vmatprep.subr.mxu1 %v3963_v1 }
0x137f   :  { %3664 = vmatpush3.msra.mxu1 %v4315_v47 }
0x1400   :  { %v4397_v57 = vpop.f32.mrf.mxu1 }
0x1402   :  { %v3484_v58 = vpop.f32.mrf.mxu1 }
0x1408   :  { %v1703_v60 = vpop.f32.mrf.mxu1 }
0x1409   :  { %v1704_v61 = vadd.f32 %v1703_v60, %v1630_v55 }
0x140a   :  { %v3513_v62 = vpop.f32.mrf.mxu1 }
0x140b   :  { %v1713_v63 = vadd.f32 %v4402_v59, %v1704_v61 }
0x140d   :  { %3748 = vtanh.f32 %v1713_v63  ;;  %v3164_v2 = vmul.f32 -1.442695, %v1713_v63 }
0x140f   :  { %3750 = vpow2.f32 %v3164_v2 }
0x1410   :  { %v1885_v0 = vpop.f32.mrf.mxu1 }
0x1412   :  { %v3535_v6 = vpop.f32.mrf.mxu1 }
0x1418   :  { %v4405_v9 = vpop.f32.mrf.mxu1 }
0x141a   :  { %v3749_v10 = vpop.eup %3748  ;;  %v3557_v12 = vpop.f32.mrf.mxu1 }
0x141b   :  { %1723 = vrot.lane.b32.xlu0 %v3749_v10, %s3965_s22 }
0x141c   :  { %v3751_v21 = vpop.eup %3750 }
0x141d   :  { %v1717_v22 = vadd.f32 1.0, %v3751_v21 }
0x141f   :  { %3752 = vrcp.f32 %v1717_v22 }
0x1420   :  { %v4408_v13 = vpop.f32.mrf.mxu1 }
0x1422   :  { %v3579_v14 = vpop.f32.mrf.mxu1 }
0x1428   :  { %v4410_v15 = vpop.f32.mrf.mxu1 }
0x142a   :  { %v3601_v16 = vpop.f32.mrf.mxu1 }
0x142c   :  { %v3753_v23 = vpop.eup %3752 }
0x142d   :  { %v1721_v8 = vmul.f32 0.0, %v3753_v23 }
0x1430   :  { %v4412_v17 = vpop.f32.mrf.mxu1 }
0x1432   :  { %v3623_v18 = vpop.f32.mrf.mxu1 }
0x1438   :  { %v4414_v19 = vpop.f32.mrf.mxu1 }
0x143a   :  { %v3645_v20 = vpop.f32.mrf.mxu1 }
0x148d   :  { %v1724_v3 = vpop.permute.xlu0 %1723 }
0x148e   :  { %v1726_v7 = vmul.f32 %v3753_v23, %v1724_v3 }
0x1490   :  { %1728 = vrot.lane.b32.xlu1 %v1726_v7, %s3958_s13 }
0x1502   :  { %v1729_v24 = vpop.permute.xlu1 %1728 }
0x1503   :  { %v1731_v25 = vadd.f32 %v1729_v24, %v1721_v8 }
0x1505   :  { %3754 = vtanh.f32 %v1731_v25 }
0x1512   :  { %v3755_v26 = vpop.eup %3754 }
0x1513   :  { %1734 = vrot.lane.b32.xlu0 %v3755_v26, %s3965_s22 }
0x1585   :  { %v1735_v27 = vpop.permute.xlu0 %1734 }
0x1586   :  { %v1737_v4 = vmul.f32 %v3753_v23, %v1735_v27 }
0x1588   :  { %1739 = vrot.lane.b32.xlu1 %v1737_v4, %s3958_s13 }
0x15fa   :  { %v1740_v28 = vpop.permute.xlu1 %1739 }
0x15fb   :  { %1742 = vst.msk [vmem:[#allocation2] sm:$0x3] %vm313_vm2, %v1740_v28  ;;  %3523 = vmatmul.mubr.msk.f32.vlgmr.msra.gmra.mxu0 %vm130_vm3, %v1740_v28 }
0x15fc   :  { %3537 = vmatpush3.msra.mxu0 %v4267_v34  ;;  %3544 = vmatprep.mubr.msk.f32.mxu0 %vm3964_vm0, %v3963_v1 }
0x15fd   :  { %3538 = vmatprep.subr.mxu0 %v3963_v1 }
0x15fe   :  { %3539 = vmatpush3.msra.mxu0 %v4275_v36 }
0x15ff   :  { %3540 = vmatprep.subr.mxu0 %v3963_v1 }
0x1600   :  { %3541 = vmatpush3.msra.mxu0 %v4279_v37 }
0x1601   :  { %3542 = vmatprep.subr.mxu0 %v3963_v1 }
0x1602   :  { %3543 = vmatpush3.msra.mxu0 %v4283_v38 }
0x1603   :  { %3558 = vmatprep.subr.mxu0 %v3963_v1 }
0x16bb   :  { %v1812_v29 = vpop.f32.mrf.mxu0 }
0x16bc   :  { %v1886_v30 = vadd.f32 %v1885_v0, %v1812_v29 }
0x16bd   :  { %v3524_v31 = vpop.f32.mrf.mxu0 }
0x16be   :  { %v1889_v5 = vadd.f32 %v4402_v59, %v1886_v30 }
0x16c0   :  { %3756 = vtanh.f32 %v1889_v5  ;;  %v3167_v11 = vmul.f32 -1.442695, %v1889_v5 }
0x16c2   :  { %3758 = vpow2.f32 %v3167_v11 }
0x16cd   :  { %v3757_v32 = vpop.eup %3756 }
0x16ce   :  { %1899 = vrot.lane.b32.xlu0 %v3757_v32, %s3965_s22 }
0x16cf   :  { %v3759_v35 = vpop.eup %3758 }
0x16d0   :  { %v1893_v39 = vadd.f32 1.0, %v3759_v35 }
0x16d2   :  { %3760 = vrcp.f32 %v1893_v39 }
0x16df   :  { %v3761_v40 = vpop.eup %3760 }
0x16e0   :  { %v1897_v44 = vmul.f32 %v3761_v40, %v1731_v25 }
0x1740   :  { %v1900_v42 = vpop.permute.xlu0 %1899 }
0x1741   :  { %v1902_v43 = vmul.f32 %v3761_v40, %v1900_v42 }
0x1743   :  { %1904 = vrot.lane.b32.xlu1 %v1902_v43, %s3958_s13 }
0x17b5   :  { %v1905_v45 = vpop.permute.xlu1 %1904 }
0x17b6   :  { %v1907_v46 = vadd.f32 %v1905_v45, %v1897_v44 }
0x17b8   :  { %3762 = vtanh.f32 %v1907_v46 }
0x17c5   :  { %v3763_v47 = vpop.eup %3762 }
0x17c6   :  { %1910 = vrot.lane.b32.xlu0 %v3763_v47, %s3965_s22 }
0x1838   :  { %v1911_v48 = vpop.permute.xlu0 %1910 }
0x1839   :  { %v1913_v49 = vmul.f32 %v3761_v40, %v1911_v48 }
0x183b   :  { %1915 = vrot.lane.b32.xlu1 %v1913_v49, %s3958_s13 }
0x18ad   :  { %v1916_v50 = vpop.permute.xlu1 %1915 }
0x18ae   :  { %1918 = vst.msk [vmem:[#allocation2 + $0x2] sm:$0x3] %vm313_vm2, %v1916_v50  ;;  %3545 = vmatmul.mubr.msk.f32.vlgmr.msra.gmra.mxu0 %vm130_vm3, %v1916_v50 }
0x18af   :  { %3559 = vmatpush3.msra.mxu0 %v4267_v34  ;;  %3566 = vmatprep.mubr.msk.f32.mxu0 %vm3964_vm0, %v3963_v1 }
0x18b0   :  { %3560 = vmatprep.subr.mxu0 %v3963_v1 }
0x18b1   :  { %3561 = vmatpush3.msra.mxu0 %v4275_v36 }
0x18b2   :  { %3562 = vmatprep.subr.mxu0 %v3963_v1 }
0x18b3   :  { %3563 = vmatpush3.msra.mxu0 %v4279_v37 }
0x18b4   :  { %3564 = vmatprep.subr.mxu0 %v3963_v1 }
0x18b5   :  { %3565 = vmatpush3.msra.mxu0 %v4283_v38 }
0x18b6   :  { %3580 = vmatprep.subr.mxu0 %v3963_v1 }
0x196e   :  { %v1988_v51 = vpop.f32.mrf.mxu0 }
0x196f   :  { %v2062_v52 = vadd.f32 %v4405_v9, %v1988_v51 }
0x1970   :  { %v3546_v53 = vpop.f32.mrf.mxu0 }
0x1971   :  { %v2065_v54 = vadd.f32 %v4402_v59, %v2062_v52 }
0x1973   :  { %3764 = vtanh.f32 %v2065_v54  ;;  %v3170_v56 = vmul.f32 -1.442695, %v2065_v54 }
0x1975   :  { %3766 = vpow2.f32 %v3170_v56 }
0x1980   :  { %v3765_v55 = vpop.eup %3764 }
0x1981   :  { %2075 = vrot.lane.b32.xlu0 %v3765_v55, %s3965_s22 }
0x1982   :  { %v3767_v58 = vpop.eup %3766 }
0x1983   :  { %v2069_v60 = vadd.f32 1.0, %v3767_v58 }
0x1985   :  { %3768 = vrcp.f32 %v2069_v60 }
0x1992   :  { %v3769_v61 = vpop.eup %3768 }
0x1993   :  { %v2073_v0 = vmul.f32 %v3769_v61, %v1907_v46 }
0x19f3   :  { %v2076_v62 = vpop.permute.xlu0 %2075 }
0x19f4   :  { %v2078_v63 = vmul.f32 %v3769_v61, %v2076_v62 }
0x19f6   :  { %2080 = vrot.lane.b32.xlu1 %v2078_v63, %s3958_s13 }
0x1a68   :  { %v2081_v6 = vpop.permute.xlu1 %2080 }
0x1a69   :  { %v2083_v9 = vadd.f32 %v2081_v6, %v2073_v0 }
0x1a6b   :  { %3770 = vtanh.f32 %v2083_v9 }
0x1a78   :  { %v3771_v10 = vpop.eup %3770 }
0x1a79   :  { %2086 = vrot.lane.b32.xlu0 %v3771_v10, %s3965_s22 }
0x1aeb   :  { %v2087_v12 = vpop.permute.xlu0 %2086 }
0x1aec   :  { %v2089_v14 = vmul.f32 %v3769_v61, %v2087_v12  ;;  %v3824_v12 = vld [vmem:[%s4582_s3] ss:$0 sm:$0xff] }
0x1aee   :  { %2091 = vrot.lane.b32.xlu1 %v2089_v14, %s3958_s13 }
0x1b60   :  { %v2092_v16 = vpop.permute.xlu1 %2091 }
0x1b61   :  { %2094 = vst.msk [vmem:[#allocation2 + $0x4] sm:$0x3] %vm313_vm2, %v2092_v16  ;;  %3567 = vmatmul.mubr.msk.f32.vlgmr.msra.gmra.mxu0 %vm130_vm3, %v2092_v16 }
0x1b62   :  { %3581 = vmatpush3.msra.mxu0 %v4267_v34  ;;  %3588 = vmatprep.mubr.msk.f32.mxu0 %vm3964_vm0, %v3963_v1 }
0x1b63   :  { %3582 = vmatprep.subr.mxu0 %v3963_v1 }
0x1b64   :  { %3583 = vmatpush3.msra.mxu0 %v4275_v36 }
0x1b65   :  { %3584 = vmatprep.subr.mxu0 %v3963_v1 }
0x1b66   :  { %3585 = vmatpush3.msra.mxu0 %v4279_v37 }
0x1b67   :  { %3586 = vmatprep.subr.mxu0 %v3963_v1 }
0x1b68   :  { %3587 = vmatpush3.msra.mxu0 %v4283_v38 }
0x1b69   :  { %3602 = vmatprep.subr.mxu0 %v3963_v1 }
0x1c21   :  { %v2164_v18 = vpop.f32.mrf.mxu0 }
0x1c22   :  { %v2238_v20 = vadd.f32 %v4408_v13, %v2164_v18 }
0x1c23   :  { %v3568_v2 = vpop.f32.mrf.mxu0 }
0x1c24   :  { %v2241_v21 = vadd.f32 %v4402_v59, %v2238_v20 }
0x1c26   :  { %3772 = vtanh.f32 %v2241_v21  ;;  %v3173_v23 = vmul.f32 -1.442695, %v2241_v21 }
0x1c28   :  { %3774 = vpow2.f32 %v3173_v23 }
0x1c33   :  { %v3773_v22 = vpop.eup %3772 }
0x1c34   :  { %2251 = vrot.lane.b32.xlu0 %v3773_v22, %s3965_s22 }
0x1c35   :  { %v3775_v3 = vpop.eup %3774 }
0x1c36   :  { %v2245_v7 = vadd.f32 1.0, %v3775_v3 }
0x1c38   :  { %3776 = vrcp.f32 %v2245_v7 }
0x1c45   :  { %v3777_v8 = vpop.eup %3776 }
0x1c46   :  { %v2249_v26 = vmul.f32 %v3777_v8, %v2083_v9 }
0x1ca6   :  { %v2252_v24 = vpop.permute.xlu0 %2251 }
0x1ca7   :  { %v2254_v25 = vmul.f32 %v3777_v8, %v2252_v24 }
0x1ca9   :  { %2256 = vrot.lane.b32.xlu1 %v2254_v25, %s3958_s13 }
0x1d1b   :  { %v2257_v27 = vpop.permute.xlu1 %2256 }
0x1d1c   :  { %v2259_v13 = vadd.f32 %v2257_v27, %v2249_v26 }
0x1d1e   :  { %3778 = vtanh.f32 %v2259_v13 }
0x1d2b   :  { %v3779_v4 = vpop.eup %3778 }
0x1d2c   :  { %2262 = vrot.lane.b32.xlu0 %v3779_v4, %s3965_s22 }
0x1d9e   :  { %v2263_v28 = vpop.permute.xlu0 %2262 }
0x1d9f   :  { %v2265_v29 = vmul.f32 %v3777_v8, %v2263_v28 }
0x1da1   :  { %2267 = vrot.lane.b32.xlu1 %v2265_v29, %s3958_s13 }
0x1e13   :  { %v2268_v30 = vpop.permute.xlu1 %2267 }
0x1e14   :  { %2270 = vst.msk [vmem:[#allocation2 + $0x6] sm:$0x3] %vm313_vm2, %v2268_v30  ;;  %3589 = vmatmul.mubr.msk.f32.vlgmr.msra.gmra.mxu0 %vm130_vm3, %v2268_v30 }
0x1e15   :  { %3603 = vmatpush3.msra.mxu0 %v4267_v34  ;;  %3610 = vmatprep.mubr.msk.f32.mxu0 %vm3964_vm0, %v3963_v1 }
0x1e16   :  { %3604 = vmatprep.subr.mxu0 %v3963_v1 }
0x1e17   :  { %3605 = vmatpush3.msra.mxu0 %v4275_v36 }
0x1e18   :  { %3606 = vmatprep.subr.mxu0 %v3963_v1 }
0x1e19   :  { %3607 = vmatpush3.msra.mxu0 %v4279_v37 }
0x1e1a   :  { %3608 = vmatprep.subr.mxu0 %v3963_v1 }
0x1e1b   :  { %3609 = vmatpush3.msra.mxu0 %v4283_v38 }
0x1e1c   :  { %3624 = vmatprep.subr.mxu0 %v3963_v1 }
0x1ed4   :  { %v2340_v31 = vpop.f32.mrf.mxu0 }
0x1ed5   :  { %v2414_v5 = vadd.f32 %v4410_v15, %v2340_v31 }
0x1ed6   :  { %v3590_v32 = vpop.f32.mrf.mxu0 }
0x1ed7   :  { %v2417_v11 = vadd.f32 %v4402_v59, %v2414_v5 }
0x1ed9   :  { %3780 = vtanh.f32 %v2417_v11  ;;  %v3176_v39 = vmul.f32 -1.442695, %v2417_v11 }
0x1edb   :  { %3782 = vpow2.f32 %v3176_v39 }
0x1ee6   :  { %v3781_v35 = vpop.eup %3780 }
0x1ee7   :  { %2427 = vrot.lane.b32.xlu0 %v3781_v35, %s3965_s22 }
0x1ee8   :  { %v3783_v40 = vpop.eup %3782 }
0x1ee9   :  { %v2421_v42 = vadd.f32 1.0, %v3783_v40 }
0x1eeb   :  { %3784 = vrcp.f32 %v2421_v42 }
0x1ef8   :  { %v3785_v43 = vpop.eup %3784 }
0x1ef9   :  { %v2425_v46 = vmul.f32 %v3785_v43, %v2259_v13 }
0x1f59   :  { %v2428_v44 = vpop.permute.xlu0 %2427 }
0x1f5a   :  { %v2430_v45 = vmul.f32 %v3785_v43, %v2428_v44 }
0x1f5c   :  { %2432 = vrot.lane.b32.xlu1 %v2430_v45, %s3958_s13 }
0x1fce   :  { %v2433_v47 = vpop.permute.xlu1 %2432 }
0x1fcf   :  { %v2435_v15 = vadd.f32 %v2433_v47, %v2425_v46  ;;  %v2975_v46 = vld [vmem:[#allocation2] sm:$0xff] }
0x1fd1   :  { %3786 = vtanh.f32 %v2435_v15 }
0x1fde   :  { %v3787_v48 = vpop.eup %3786 }
0x1fdf   :  { %2438 = vrot.lane.b32.xlu0 %v3787_v48, %s3965_s22 }
0x2051   :  { %v2439_v49 = vpop.permute.xlu0 %2438 }
0x2052   :  { %v2441_v50 = vmul.f32 %v3785_v43, %v2439_v49 }
0x2054   :  { %2443 = vrot.lane.b32.xlu1 %v2441_v50, %s3958_s13 }
0x20c6   :  { %v2444_v51 = vpop.permute.xlu1 %2443 }
0x20c7   :  { %2446 = vst.msk [vmem:[#allocation2 + $0x8] sm:$0x3] %vm313_vm2, %v2444_v51  ;;  %3611 = vmatmul.mubr.msk.f32.vlgmr.msra.gmra.mxu0 %vm130_vm3, %v2444_v51 }
0x20c8   :  { %3625 = vmatpush3.msra.mxu0 %v4267_v34  ;;  %3632 = vmatprep.mubr.msk.f32.mxu0 %vm3964_vm0, %v3963_v1 }
0x20c9   :  { %3626 = vmatprep.subr.mxu0 %v3963_v1 }
0x20ca   :  { %3627 = vmatpush3.msra.mxu0 %v4275_v36 }
0x20cb   :  { %3628 = vmatprep.subr.mxu0 %v3963_v1 }
0x20cc   :  { %3629 = vmatpush3.msra.mxu0 %v4279_v37 }
0x20cd   :  { %3630 = vmatprep.subr.mxu0 %v3963_v1 }
0x20ce   :  { %3631 = vmatpush3.msra.mxu0 %v4283_v38 }
0x20cf   :  { %3646 = vmatprep.subr.mxu0 %v3963_v1 }
0x2187   :  { %v2516_v52 = vpop.f32.mrf.mxu0 }
0x2188   :  { %v2590_v53 = vadd.f32 %v4412_v17, %v2516_v52  ;;  %v1521_v17 = vadd.f32 %v4299_v41, %v4397_v57 }
0x2189   :  { %v3612_v54 = vpop.f32.mrf.mxu0 }
0x218a   :  { %v2593_v55 = vadd.f32 %v4402_v59, %v2590_v53  ;;  %v1524_v14 = vadd.f32 %v3824_v12, %v1521_v17  ;;  %v2977_v17 = vld [vmem:[#allocation12] sm:$0xff] }
0x218c   :  { %3788 = vtanh.f32 %v2593_v55  ;;  %v3179_v58 = vmul.f32 -1.442695, %v2593_v55  ;;  %v3161_v20 = vmul.f32 -1.442695, %v1524_v14 }
0x218e   :  { %3790 = vpow2.f32 %v3179_v58 }
0x2199   :  { %v3789_v56 = vpop.eup %3788 }
0x219a   :  { %2603 = vrot.lane.b32.xlu0 %v3789_v56, %s3965_s22 }
0x219b   :  { %v3791_v60 = vpop.eup %3790 }
0x219c   :  { %v2597_v61 = vadd.f32 1.0, %v3791_v60 }
0x219e   :  { %3792 = vrcp.f32 %v2597_v61 }
0x21ab   :  { %v3793_v62 = vpop.eup %3792 }
0x21ac   :  { %v2601_v6 = vmul.f32 %v3793_v62, %v2435_v15 }
0x220c   :  { %v2604_v63 = vpop.permute.xlu0 %2603 }
0x220d   :  { %v2606_v0 = vmul.f32 %v3793_v62, %v2604_v63  ;;  %v2979_v63 = vld [vmem:[#allocation12 + $0x10] sm:$0xff] }
0x220f   :  { %2608 = vrot.lane.b32.xlu1 %v2606_v0, %s3958_s13  ;;  %v2978_v0 = vld [vmem:[#allocation12 + $0x8] sm:$0xff] }
0x2281   :  { %v2609_v9 = vpop.permute.xlu1 %2608 }
0x2282   :  { %v2611_v10 = vadd.f32 %v2609_v9, %v2601_v6 }
0x2284   :  { %3794 = vtanh.f32 %v2611_v10 }
0x2285   :  { %3796 = vtanh.f32 %v1524_v14  ;;  %v3186_v14 = vld [vmem:[%s4587_s8] ss:$0 sm:$0xff] }
0x2286   :  { %3798 = vpow2.f32 %v3161_v20 }
0x2291   :  { %v3795_v16 = vpop.eup %3794 }
0x2292   :  { %2614 = vrot.lane.b32.xlu0 %v3795_v16, %s3965_s22  ;;  %v3797_v18 = vpop.eup %3796 }
0x2293   :  { %v3799_v2 = vpop.eup %3798 }
0x2294   :  { %v1528_v41 = vadd.f32 1.0, %v3799_v2 }
0x2296   :  { %1534 = vrot.lane.b32.xlu0 %v3797_v18, %s3965_s22  ;;  %3800 = vrcp.f32 %v1528_v41 }
0x22a3   :  { %v3801_v22 = vpop.eup %3800 }
0x22a4   :  { %v1532_v8 = vmul.f32 %v3801_v22, %v4264_v33 }
0x2304   :  { %v2615_v57 = vpop.permute.xlu0 %2614 }
0x2305   :  { %v2617_v21 = vmul.f32 %v3793_v62, %v2615_v57 }
0x2307   :  { %2619 = vrot.lane.b32.xlu1 %v2617_v21, %s3958_s13 }
0x2308   :  { %v1535_v23 = vpop.permute.xlu0 %1534 }
0x2309   :  { %v1537_v3 = vmul.f32 %v3801_v22, %v1535_v23 }
0x230b   :  { %1539 = vrot.lane.b32.xlu0 %v1537_v3, %s3958_s13 }
0x2379   :  { %v2620_v7 = vpop.permute.xlu1 %2619 }
0x237a   :  { %2622 = vst.msk [vmem:[#allocation2 + $0xa] sm:$0x3] %vm313_vm2, %v2620_v7  ;;  %3633 = vmatmul.mubr.msk.f32.vlgmr.msra.gmra.mxu0 %vm130_vm3, %v2620_v7 }
0x237b   :  { %3647 = vmatpush3.msra.mxu0 %v4267_v34  ;;  %3654 = vmatprep.mubr.msk.f32.mxu0 %vm3964_vm0, %v3963_v1 }
0x237c   :  { %3648 = vmatprep.subr.mxu0 %v3963_v1 }
0x237d   :  { %v1540_v24 = vpop.permute.xlu0 %1539  ;;  %3649 = vmatpush3.msra.mxu0 %v4275_v36 }
0x237e   :  { %v1542_v25 = vadd.f32 %v1540_v24, %v1532_v8  ;;  %3650 = vmatprep.subr.mxu0 %v3963_v1 }
0x237f   :  { %3651 = vmatpush3.msra.mxu0 %v4279_v37 }
0x2380   :  { %3802 = vtanh.f32 %v1542_v25  ;;  %3652 = vmatprep.subr.mxu0 %v3963_v1 }
0x2381   :  { %3653 = vmatpush3.msra.mxu0 %v4283_v38 }
0x238d   :  { %v3803_v34 = vpop.eup %3802 }
0x238e   :  { %1545 = vrot.lane.b32.xlu0 %v3803_v34, %s3965_s22 }
0x2400   :  { %v1546_v26 = vpop.permute.xlu0 %1545 }
0x2401   :  { %v1548_v33 = vmul.f32 %v3801_v22, %v1546_v26 }
0x2403   :  { %1550 = vrot.lane.b32.xlu0 %v1548_v33, %s3958_s13 }
0x243a   :  { %v2692_v27 = vpop.f32.mrf.mxu0 }
0x243b   :  { %v2766_v36 = vadd.f32 %v4414_v19, %v2692_v27 }
0x243c   :  { %v3634_v13 = vpop.f32.mrf.mxu0 }
0x243d   :  { %v2769_v4 = vadd.f32 %v4402_v59, %v2766_v36  ;;  %v3189_v13 = vld [vmem:[%s4588_s9] ss:$0 sm:$0xff] }
0x243f   :  { %3804 = vtanh.f32 %v2769_v4  ;;  %v3182_v28 = vmul.f32 -1.442695, %v2769_v4 }
0x2441   :  { %3806 = vpow2.f32 %v3182_v28 }
0x244c   :  { %v3805_v37 = vpop.eup %3804 }
0x244d   :  { %2779 = vrot.lane.b32.xlu1 %v3805_v37, %s3965_s22 }
0x244e   :  { %v3807_v29 = vpop.eup %3806 }
0x244f   :  { %v2773_v30 = vadd.f32 1.0, %v3807_v29 }
0x2451   :  { %3808 = vrcp.f32 %v2773_v30 }
0x245e   :  { %v3809_v31 = vpop.eup %3808 }
0x245f   :  { %v2777_v32 = vmul.f32 %v3809_v31, %v2611_v10 }
0x2475   :  { %v1551_v1 = vpop.permute.xlu0 %1550 }
0x2476   :  { %1553 = vst.msk [vmem:[#allocation2 + $0xe] sm:$0x3] %vm313_vm2, %v1551_v1 }
0x247d   :  { %v2799_v38 = vld [vmem:[#allocation2 + $0xe] sm:$0x3] }
0x247e   :  { %3666 = vmatmul.mubr.msk.f32.vlgmr.msra.gmra.mxu1 %vm130_vm3, %v2799_v38 }
0x24bf   :  { %v2780_v19 = vpop.permute.xlu1 %2779 }
0x24c0   :  { %v2782_v5 = vmul.f32 %v3809_v31, %v2780_v19 }
0x24c2   :  { %2784 = vrot.lane.b32.xlu1 %v2782_v5, %s3958_s13 }
0x2534   :  { %v2785_v11 = vpop.permute.xlu1 %2784 }
0x2535   :  { %v2787_v35 = vadd.f32 %v2785_v11, %v2777_v32 }
0x2537   :  { %3810 = vtanh.f32 %v2787_v35 }
0x253e   :  { %v2941_v39 = vpop.f32.mrf.mxu1 }
0x2540   :  { %v3667_v40 = vpop.f32.mrf.mxu1 }
0x2544   :  { %v3811_v42 = vpop.eup %3810 }
0x2545   :  { %2790 = vrot.lane.b32.xlu1 %v3811_v42, %s3965_s22 }
0x25b7   :  { %v2791_v43 = vpop.permute.xlu1 %2790 }
0x25b8   :  { %v2793_v44 = vmul.f32 %v3809_v31, %v2791_v43  ;;  %v3190_v31 = vld [vmem:[#allocation3] ss:$0 sm:$0xff] }
0x25ba   :  { %2795 = vrot.lane.b32.xlu1 %v2793_v44, %s3958_s13 }
0x262c   :  { %v2796_v45 = vpop.permute.xlu1 %2795 }
0x262d   :  { %2798 = vst.msk [vmem:[#allocation2 + $0xc] sm:$0x3] %vm313_vm2, %v2796_v45  ;;  %3655 = vmatmul.mubr.msk.f32.vlgmr.msra.gmra.mxu0 %vm130_vm3, %v2796_v45 }
0x262e   :  { %3676 = vmatprep.mubr.msk.f32.mxu0 %vm130_vm3, %v2975_v46 }
0x26ed   :  { %v2868_v47 = vpop.f32.mrf.mxu0 }
0x26ee   :  { %v2942_v15 = vadd.f32 %v2941_v39, %v2868_v47 }
0x26ef   :  { %v3656_v48 = vpop.f32.mrf.mxu0 }
0x26f0   :  { %v2945_v49 = vadd.f32 %v4402_v59, %v2942_v15  ;;  %v2980_v59 = vld [vmem:[#allocation12 + $0x18] sm:$0xff] }
0x26f1   :  { %3668 = vmatprep.subr.mxu0 %v2980_v59 }
0x26f2   :  { %3812 = vtanh.f32 %v2945_v49  ;;  %v3185_v51 = vmul.f32 -1.442695, %v2945_v49  ;;  %3669 = vmatpush3.msra.mxu0 %v2980_v59 }
0x26f3   :  { %3670 = vmatprep.subr.mxu0 %v2979_v63 }
0x26f4   :  { %3814 = vpow2.f32 %v3185_v51  ;;  %3671 = vmatpush3.msra.mxu0 %v2979_v63 }
0x26f5   :  { %3672 = vmatprep.subr.mxu0 %v2978_v0 }
0x26f6   :  { %3673 = vmatpush3.msra.mxu0 %v2978_v0 }
0x26f7   :  { %3674 = vmatprep.subr.mxu0 %v2977_v17 }
0x26f8   :  { %3675 = vmatpush3.msra.mxu0 %v2977_v17 }
0x26ff   :  { %v3813_v50 = vpop.eup %3812 }
0x2700   :  { %2955 = vrot.lane.b32.xlu0 %v3813_v50, %s3965_s22 }
0x2701   :  { %v3815_v52 = vpop.eup %3814 }
0x2702   :  { %v2949_v53 = vadd.f32 1.0, %v3815_v52 }
0x2704   :  { %3816 = vrcp.f32 %v2949_v53 }
0x2711   :  { %v3817_v54 = vpop.eup %3816 }
0x2712   :  { %v2953_v58 = vmul.f32 %v3817_v54, %v2787_v35 }
0x2772   :  { %v2956_v55 = vpop.permute.xlu0 %2955 }
0x2773   :  { %v2958_v56 = vmul.f32 %v3817_v54, %v2956_v55 }
0x2775   :  { %2960 = vrot.lane.b32.xlu1 %v2958_v56, %s3958_s13 }
0x27e7   :  { %v2961_v60 = vpop.permute.xlu1 %2960 }
0x27e8   :  { %v2963_v61 = vadd.f32 %v2961_v60, %v2953_v58 }
0x27ea   :  { %3818 = vtanh.f32 %v2963_v61 }
0x27f7   :  { %v3819_v62 = vpop.eup %3818 }
0x27f8   :  { %2966 = vrot.lane.b32.xlu0 %v3819_v62, %s3965_s22 }
0x286a   :  { %v2967_v6 = vpop.permute.xlu0 %2966 }
0x286b   :  { %v2969_v9 = vmul.f32 %v3817_v54, %v2967_v6 }
0x286d   :  { %2971 = vrot.lane.b32.xlu1 %v2969_v9, %s3958_s13 }
0x28df   :  { %v2972_v10 = vpop.permute.xlu1 %2971 }
0x28e0   :  { %2974 = vst.msk [vmem:[#allocation2 + $0xe] sm:$0x3] %vm313_vm2, %v2972_v10 }
0x28e7   :  { %v2976_v12 = vld [vmem:[#allocation2 + $0x8] sm:$0xff] }
0x28e8   :  { %3677 = vmatmul.mubr.msk.f32.vlgmr.msra.gmra.mxu0 %vm130_vm3, %v2976_v12 }
0x29a8   :  { %v3678_v16 = vpop.f32.mrf.mxu0 }
0x29a9   :  { %v3066_v18 = vadd.f32 %v3678_v16, %v3186_v14 }
0x29aa   :  { %v3060_v20 = vpop.f32.mrf.mxu0 }
0x29ab   :  { %v3070_v2 = vmul.f32 %v3066_v18, %v3066_v18  ;;  %v3061_v41 = vadd.f32 %v3186_v14, %v3060_v20 }
0x29ad   :  { %v3072_v57 = vmul.f32 %v3070_v2, %v3066_v18  ;;  %v3069_v21 = vmul.f32 %v3061_v41, %v3061_v41 }
0x29af   :  { %v3074_v22 = vmul.f32 0.044715, %v3072_v57  ;;  %v3071_v23 = vmul.f32 %v3069_v21, %v3061_v41 }
0x29b1   :  { %v3076_v3 = vadd.f32 %v3074_v22, %v3066_v18  ;;  %v3073_v7 = vmul.f32 0.044715, %v3071_v23 }
0x29b3   :  { %v3078_v8 = vmul.f32 0.7978846, %v3076_v3  ;;  %v3075_v24 = vadd.f32 %v3073_v7, %v3061_v41 }
0x29b5   :  { %3820 = vtanh.f32 %v3078_v8  ;;  %v3077_v25 = vmul.f32 0.7978846, %v3075_v24 }
0x29b7   :  { %3822 = vtanh.f32 %v3077_v25 }
0x29c2   :  { %v3821_v34 = vpop.eup %3820 }
0x29c3   :  { %v3082_v26 = vadd.f32 1.0, %v3821_v34 }
0x29c4   :  { %v3823_v33 = vpop.eup %3822 }
0x29c5   :  { %v3084_v27 = vmul.f32 0.5, %v3082_v26  ;;  %v3081_v36 = vadd.f32 1.0, %v3823_v33 }
0x29c7   :  { %v3086_v4 = vmul.f32 %v3084_v27, %v3066_v18  ;;  %v3083_v37 = vmul.f32 0.5, %v3081_v36 }
0x29c9   :  { %v3095_v1 = vmul.f32 %v3189_v13, %v3086_v4  ;;  %v3085_v38 = vmul.f32 %v3083_v37, %v3061_v41 }
0x29cb   :  { %v3099_v28 = vsel %vm130_vm3, %v3095_v1, 0.0  ;;  %v3094_v29 = vmul.f32 %v3189_v13, %v3085_v38 }
0x29cc   :  { %3100 = vadd.xlane.f32.xlu1 %v3099_v28 }
0x29cd   :  { %v3096_v30 = vsel %vm130_vm3, %v3094_v29, 0.0 }
0x29ce   :  { %3097 = vadd.xlane.f32.xlu0 %v3096_v30 }
0x2a55   :  { %v3101_v19 = vpop.xlane.xlu1 %3100 }
0x2a56   :  { %v3110_v5 = vadd.f32 %v3190_v31, %v3101_v19 }
0x2a57   :  { %v3098_v32 = vpop.xlane.xlu0 %3097 }
0x2a58   :  { %3194 = vst.msk [vmem:[%s4590_s11 + $0x8] sm:$0x3] %vm3111_vm4, %v3110_v5  ;;  %v3109_v11 = vadd.f32 %v3190_v31, %v3098_v32 }
0x2a59   :  { %3195 = vst.msk [vmem:[%s4590_s11 + $0x8] sm:$0xc] %vm3114_vm5, %v3110_v5 }
0x2a5a   :  { %3196 = vst.msk [vmem:[%s4590_s11 + $0x8] sm:$0x30] %vm3117_vm6, %v3110_v5  ;;  %3192 = vst.msk [vmem:[%s4590_s11] sm:$0x30] %vm3117_vm6, %v3109_v11 }
0x2a5b   :  { %3197 = vst.msk [vmem:[%s4590_s11 + $0x8] sm:$0xc0] %vm3120_vm7, %v3110_v5  ;;  %3193 = vst.msk [vmem:[%s4590_s11] sm:$0xc0] %vm3120_vm7, %v3109_v11 }
0x2a5c   :  { %3112 = vst.msk [vmem:[%s4590_s11] sm:$0x3] %vm3111_vm4, %v3109_v11 }
0x2a5d   :  { %3191 = vst.msk [vmem:[%s4590_s11] sm:$0xc] %vm3114_vm5, %v3109_v11 }
0x2a5e   :  { %3134 = vsyncpa [#allocation5], 1 }
0x2a5f   :  { %3135 = vsyncpa [#allocation7], 1 }
0x2a60   :  { %3136 = vsyncpa [#allocation10], 1 }
0x2a61   :  { %3137 = vsyncpa [#allocation13], 1 }

</bundles_post_ra>
